<compile_context>
chip_gen: v5e
topology: v5e:2x2
jax: 0.10.0
libtpu: 0.0.40
codegen_flags: <defaults>
</compile_context>

<pallas_src>
import functools

import jax
import jax.numpy as jnp
from jax import lax
from jax.experimental import pallas as pl
from jax.experimental.pallas import tpu as pltpu

_NEG_BIG = -1e30        # finite "-inf" stand-in: keeps online-softmax NaN-free
_RESCALE_CLAMP = 80.0   # rank-1 rescale exponent clamp (see header note)


def _round_up(x, m):
    return ((x + m - 1) // m) * m


def _pick_tile_m(n, tile_n, cap):
    """Largest power-of-two multiple of tile_n <= cap with modest row padding."""
    best = tile_n
    tm = tile_n
    while tm <= cap:
        if _round_up(n, tm) - n <= max(tile_n, n // 8):
            best = tm
        tm *= 2
    return best


def _clip_loss_kernel(scale_ref, img_ref, txt_ref, out_ref,
                      row_m, row_l, col_m, col_l, loss_acc,
                      *, n_true, n_pad, tm, tn, exact_softmax):
    # scale_ref : SMEM (1,) f32 (scalar prefetch)
    # img_ref   : VMEM (tm, d_pad) image-feature rows for row tile i
    # txt_ref   : VMEM (tn, d_pad) text-feature rows for col tile j
    # out_ref   : VMEM (1, 1) f32 scalar loss
    # scratch   : row_m/row_l (tm,1), col_m/col_l (1,n_pad), loss_acc (1,1)
    i = pl.program_id(0)
    j = pl.program_id(1)
    ni = pl.num_programs(0)
    nj = pl.num_programs(1)
    needs_pad = (n_pad != n_true)   # static Python bool

    scale = scale_ref[0]

    # ---- one-time init: column (text-side) accumulators + loss accumulator --
    @pl.when(jnp.logical_and(i == 0, j == 0))
    def _():
        col_m[...] = jnp.full_like(col_m, _NEG_BIG)
        col_l[...] = jnp.zeros_like(col_l)
        loss_acc[...] = jnp.zeros_like(loss_acc)

    # ---- per-row-tile init: row (image-side) accumulators --------------------
    @pl.when(j == 0)
    def _():
        row_m[...] = jnp.full_like(row_m, _NEG_BIG)
        row_l[...] = jnp.zeros_like(row_l)

    # ---- (tm, tn) logits tile: native-dtype (bf16) operands straight to the
    #      MXU, contraction on the lane (D) axis of both -> no transpose, f32 acc.
    s = lax.dot_general(img_ref[...], txt_ref[...],
                        dimension_numbers=(((1,), (1,)), ((), ())),
                        preferred_element_type=jnp.float32)
    s = s * scale   # per-tile scalar scale, hidden under the MXU

    # ---- online row / column LSE updates -------------------------------------
    row_tile_max = jnp.max(s, axis=-1, keepdims=True)           # (tm, 1)
    col_tile_max = jnp.max(s, axis=0, keepdims=True)            # (1, tn)

    m_new = jnp.maximum(row_m[...], row_tile_max)               # (tm, 1)
    off = pl.multiple_of(j * tn, tn)
    cm_old = col_m[:, pl.ds(off, tn)]                           # (1, tn)
    cl_old = col_l[:, pl.ds(off, tn)]
    cm_new = jnp.maximum(cm_old, col_tile_max)

    alpha = jnp.exp(row_m[...] - m_new)                         # (tm, 1)
    beta = jnp.exp(cm_old - cm_new)                             # (1, tn)

    p = jnp.exp(s - m_new)                                      # the one big EUP pass
    row_sum = jnp.sum(p, axis=-1, keepdims=True)                # (tm, 1)

    if exact_softmax:
        # Reference-exact two-exp path (use when logit dynamic range may be huge).
        col_sum = jnp.sum(jnp.exp(s - cm_new), axis=0, keepdims=True)
    else:
        # exp(s - cm_new) == p * exp(m_new - m0) * exp(m0 - cm_new), m0 = max(m_new).
        # Clamped rank-1 rescale: intermediates stay finite; exact whenever
        # m0 - cm_new <= _RESCALE_CLAMP, otherwise only terms that are
        # >= exp(-_RESCALE_CLAMP) below the running max are dropped (never
        # overestimates).  Saves one full (tm,tn) EUP exp + one VPU sub pass.
        m0 = jnp.max(m_new, axis=0, keepdims=True)              # (1, 1)
        u = jnp.exp(m_new - m0)                                 # (tm, 1), <= 1
        v = jnp.exp(jnp.minimum(m0 - cm_new, _RESCALE_CLAMP))   # (1, tn)
        col_sum = jnp.sum(p * u, axis=0, keepdims=True) * v     # (1, tn)

    row_l[...] = alpha * row_l[...] + row_sum
    row_m[...] = m_new
    col_l[:, pl.ds(off, tn)] = beta * cl_old + col_sum
    col_m[:, pl.ds(off, tn)] = cm_new

    # ---- diagonal (correct-pair logits) extracted from s on diag-crossing tiles
    @pl.when(jnp.logical_and(j * tn >= i * tm, j * tn < (i + 1) * tm))
    def _():
        r_ids = lax.broadcasted_iota(jnp.int32, (tm, tn), 0)
        c_ids = lax.broadcasted_iota(jnp.int32, (tm, tn), 1)
        on_diag = (i * tm + r_ids) == (j * tn + c_ids)
        # Padded diagonal entries are exactly 0 (zero-padded features): no mask.
        d = jnp.sum(jnp.where(on_diag, s, 0.0), axis=1, keepdims=True)   # (tm, 1)
        d_sum = jnp.sum(d, axis=0, keepdims=True)                        # (1, 1)
        loss_acc[...] = loss_acc[...] - 2.0 * d_sum

    # ---- row-tile finalize: accumulate image->text CE numerator --------------
    @pl.when(j == nj - 1)
    def _():
        rl = row_l[...]
        if needs_pad:
            # Each of the (n_pad - n_true) zero-padded text columns contributed
            # exp(0) to every row's sum; remove analytically.  row_m >= 0 here
            # (every row has seen a zero pad logit), so exp(-row_m) is safe.
            rl = rl - jnp.float32(n_pad - n_true) * jnp.exp(-row_m[...])
            rl = jnp.maximum(rl, jnp.float32(1e-30))
        row_lse = row_m[...] + jnp.log(rl)                      # (tm, 1)
        if needs_pad:
            r_ids = lax.broadcasted_iota(jnp.int32, (tm, 1), 0) + i * tm
            row_lse = jnp.where(r_ids < n_true, row_lse, 0.0)
        loss_acc[...] = loss_acc[...] + jnp.sum(row_lse, axis=0, keepdims=True)

    # ---- grid finalize: text->image CE numerator + mean ----------------------
    @pl.when(jnp.logical_and(i == ni - 1, j == nj - 1))
    def _():
        cl = col_l[...]
        if needs_pad:
            # Remove the (n_pad - n_true) zero-padded image rows' exp(0) terms.
            cl = cl - jnp.float32(n_pad - n_true) * jnp.exp(-col_m[...])
            cl = jnp.maximum(cl, jnp.float32(1e-30))
        col_lse = col_m[...] + jnp.log(cl)                      # (1, n_pad)
        if needs_pad:
            c_ids = lax.broadcasted_iota(jnp.int32, (1, n_pad), 1)
            col_lse = jnp.where(c_ids < n_true, col_lse, 0.0)
        total = loss_acc[...] + jnp.sum(col_lse, axis=1, keepdims=True)
        out_ref[...] = total * jnp.float32(1.0 / (2.0 * n_true))


def clip_loss(image_features, text_features, logit_scale, *,
              tile_m=None, tile_n=None, compute_dtype=jnp.bfloat16,
              exact_softmax=False, output_dict=False):
    """Pallas ClipLoss.forward (world_size=1).  bf16 MXU operands, f32 math."""
    assert image_features.shape == text_features.shape
    assert image_features.ndim == 2
    n, d = image_features.shape

    # ---- tile selection: large row tile (arithmetic intensity), small col tile
    if tile_n is None:
        tile_n = 256 if n >= 4096 else 128      # keep 128 for small/medium N (v5e-friendly)
    tile_n = max(128, _round_up(tile_n, 128))
    if tile_m is None:
        cap = 1024 if n >= 4096 else 512
        tile_m = _pick_tile_m(n, tile_n, cap)
    tile_m = _round_up(max(tile_m, tile_n), tile_n)

    n_pad = _round_up(n, tile_m)                # divisible by tile_m and tile_n
    d_pad = _round_up(max(d, 1), 128)           # lane-dense contraction axis

    # ---- cast to the MXU compute dtype, pad only if actually needed ----------
    img = image_features.astype(compute_dtype)
    txt = text_features.astype(compute_dtype)
    if (n_pad, d_pad) != (n, d):
        img = jnp.pad(img, ((0, n_pad - n), (0, d_pad - d)))   # pads are exact zeros
        txt = jnp.pad(txt, ((0, n_pad - n), (0, d_pad - d)))

    scale = jnp.reshape(jnp.asarray(logit_scale, dtype=jnp.float32), (1,))
    grid = (n_pad // tile_m, n_pad // tile_n)

    # ---- explicit VMEM budget (double-buffered inputs + scratch + slab headroom)
    itemsize = jnp.dtype(compute_dtype).itemsize
    est = (2 * (tile_m + tile_n) * d_pad * itemsize
           + (2 * tile_m + 2 * n_pad + 8) * 4
           + 6 * tile_m * tile_n * 4)
    vmem_limit = int(min(max(2 * est, 32 * 1024 * 1024), 64 * 1024 * 1024))

    kernel = functools.partial(_clip_loss_kernel, n_true=n, n_pad=n_pad,
                               tm=tile_m, tn=tile_n, exact_softmax=exact_softmax)

    out = pl.pallas_call(
        kernel,
        out_shape=jax.ShapeDtypeStruct((1, 1), jnp.float32),
        grid_spec=pltpu.PrefetchScalarGridSpec(
            num_scalar_prefetch=1,              # logit_scale lands in SMEM
            grid=grid,
            in_specs=[
                pl.BlockSpec((tile_m, d_pad), lambda i, j, s_ref: (i, 0)),  # image rows
                pl.BlockSpec((tile_n, d_pad), lambda i, j, s_ref: (j, 0)),  # text rows
            ],
            out_specs=pl.BlockSpec((1, 1), lambda i, j, s_ref: (0, 0)),
            scratch_shapes=[
                pltpu.VMEM((tile_m, 1), jnp.float32),   # running row max
                pltpu.VMEM((tile_m, 1), jnp.float32),   # running row sum-exp
                pltpu.VMEM((1, n_pad), jnp.float32),    # running col max
                pltpu.VMEM((1, n_pad), jnp.float32),    # running col sum-exp
                pltpu.VMEM((1, 1), jnp.float32),        # loss accumulator
            ],
        ),
        compiler_params=pltpu.CompilerParams(
            # Both axes carry cross-iteration accumulator state (see v7x TODO).
            dimension_semantics=("arbitrary", "arbitrary"),
            vmem_limit_bytes=vmem_limit,
        ),
    )(scale, img, txt)

    loss = out[0, 0]
    return {"contrastive_loss": loss} if output_dict else loss


def clip_loss_ref(image_features, text_features, logit_scale):
    """Pure-JAX reference (f32, highest-precision matmul) for sanity checking."""
    logits_per_image = logit_scale * jnp.dot(
        image_features, text_features.T, precision=lax.Precision.HIGHEST)
    logits_per_text = logits_per_image.T
    nn = logits_per_image.shape[0]

    def ce(logits):
        lse = jax.scipy.special.logsumexp(logits, axis=-1)
        correct = jnp.diagonal(logits)
        return jnp.mean(lse - correct)

    del nn
    return (ce(logits_per_image) + ce(logits_per_text)) / 2.0


if __name__ == "__main__":
    key = jax.random.PRNGKey(0)
    k1, k2, k3, k4 = jax.random.split(key, 4)
    logit_scale = jnp.float32(14.2857)   # ~ exp(log(1/0.07)), the usual CLIP value

    def _norm(x):
        return x / jnp.linalg.norm(x, axis=-1, keepdims=True)

    # Case 1: batch 8, dim 32 -> single padded 128x128 tile.
    N, D = 8, 32
    img = _norm(jax.random.normal(k1, (N, D), dtype=jnp.float32))
    txt = _norm(jax.random.normal(k2, (N, D), dtype=jnp.float32))

    loss = jax.block_until_ready(clip_loss(img, txt, logit_scale))
    # Tight check against a reference fed the same bf16-quantized features
    # (apples-to-apples with the bf16-in / f32-acc MXU path).
    ref_bf16 = clip_loss_ref(img.astype(jnp.bfloat16).astype(jnp.float32),
                             txt.astype(jnp.bfloat16).astype(jnp.float32),
                             logit_scale)
    assert jnp.allclose(loss, ref_bf16, rtol=2e-3, atol=2e-3), (loss, ref_bf16)
    # Loose sanity check against the pure-f32 reference (bf16 rounding only).
    ref_f32 = clip_loss_ref(img, txt, logit_scale)
    assert jnp.allclose(loss, ref_f32, rtol=5e-2, atol=1e-1), (loss, ref_f32)

    # Case 2: batch 200, dim 96 -> padded to 256/128, rectangular 256x128 tiles,
    # exercises the multi-column-tile online LSE + analytic padding correction.
    N2, D2 = 200, 96
    img2 = _norm(jax.random.normal(k3, (N2, D2), dtype=jnp.float32))
    txt2 = _norm(jax.random.normal(k4, (N2, D2), dtype=jnp.float32))

    loss2 = jax.block_until_ready(clip_loss(img2, txt2, logit_scale))
    ref2_bf16 = clip_loss_ref(img2.astype(jnp.bfloat16).astype(jnp.float32),
                              txt2.astype(jnp.bfloat16).astype(jnp.float32),
                              logit_scale)
    assert jnp.allclose(loss2, ref2_bf16, rtol=2e-3, atol=2e-3), (loss2, ref2_bf16)

    # The exact (two-exp) softmax path matches the single-exp factorized path.
    loss2_exact = jax.block_until_ready(
        clip_loss(img2, txt2, logit_scale, exact_softmax=True))
    assert jnp.allclose(loss2, loss2_exact, rtol=1e-4, atol=1e-4), (loss2, loss2_exact)

    print("KERNEL_OK")
</pallas_src>

<mosaic_0001>
module attributes {stable_mosaic.version = 11 : i64} {
  func.func @_clip_loss_kernel(%arg0: i32, %arg1: i32, %arg2: memref<1xf32, #tpu.memory_space<smem>>, %arg3: memref<128x128xbf16, #tpu.memory_space<vmem>>, %arg4: memref<128x128xbf16, #tpu.memory_space<vmem>>, %arg5: memref<1x1xf32, #tpu.memory_space<vmem>>, %arg6: memref<128x1xf32, #tpu.memory_space<vmem>>, %arg7: memref<128x1xf32, #tpu.memory_space<vmem>>, %arg8: memref<1x128xf32, #tpu.memory_space<vmem>>, %arg9: memref<1x128xf32, #tpu.memory_space<vmem>>, %arg10: memref<1x1xf32, #tpu.memory_space<vmem>>) attributes {dimension_semantics = [#tpu.dimension_semantics<arbitrary>, #tpu.dimension_semantics<arbitrary>], iteration_bounds = array<i64: 1, 1>, scalar_prefetch = 1 : i64, scratch_operands = 5 : i64, tpu.core_type = #tpu.core_type<tc>, window_params = [{transform_indices = @transform_0, window_bounds = array<i64: 128, 128>}, {transform_indices = @transform_1, window_bounds = array<i64: 128, 128>}, {pipeline_mode = #tpu.pipeline_mode<synchronous>, transform_indices = @transform_2, window_bounds = array<i64: 1, 1>}]} {
    %c0 = arith.constant 0 : index
    %0 = memref.load %arg2[%c0] : memref<1xf32, #tpu.memory_space<smem>>
    %c0_i32 = arith.constant 0 : i32
    %1 = arith.cmpi eq, %arg0, %c0_i32 : i32
    %c0_i32_0 = arith.constant 0 : i32
    %2 = arith.cmpi eq, %arg1, %c0_i32_0 : i32
    %3 = arith.andi %1, %2 : i1
    %4 = arith.extui %3 : i1 to i32
    %c0_i32_1 = arith.constant 0 : i32
    %5 = arith.cmpi ne, %4, %c0_i32_1 : i32
    scf.if %5 {
      %cst_38 = arith.constant -1.000000e+30 : f32
      %81 = vector.broadcast %cst_38 : f32 to vector<1x128xf32>
      %c0_39 = arith.constant 0 : index
      %c0_40 = arith.constant 0 : index
      %82 = vector.load %arg8[%c0_39, %c0_40] : memref<1x128xf32, #tpu.memory_space<vmem>>, vector<1x128xf32>
      tpu.vector_store %arg8[%c0_39, %c0_40], %81 {strides = array<i32>} : memref<1x128xf32, #tpu.memory_space<vmem>>, vector<1x128xf32>,
      %cst_41 = arith.constant 0.000000e+00 : f32
      %83 = vector.broadcast %cst_41 : f32 to vector<1x128xf32>
      %c0_42 = arith.constant 0 : index
      %c0_43 = arith.constant 0 : index
      %84 = vector.load %arg9[%c0_42, %c0_43] : memref<1x128xf32, #tpu.memory_space<vmem>>, vector<1x128xf32>
      tpu.vector_store %arg9[%c0_42, %c0_43], %83 {strides = array<i32>} : memref<1x128xf32, #tpu.memory_space<vmem>>, vector<1x128xf32>,
      %cst_44 = arith.constant 0.000000e+00 : f32
      %85 = vector.broadcast %cst_44 : f32 to vector<1x1xf32>
      %c0_45 = arith.constant 0 : index
      %c0_46 = arith.constant 0 : index
      %86 = vector.load %arg10[%c0_45, %c0_46] : memref<1x1xf32, #tpu.memory_space<vmem>>, vector<1x1xf32>
      tpu.vector_store %arg10[%c0_45, %c0_46], %85 {strides = array<i32>} : memref<1x1xf32, #tpu.memory_space<vmem>>, vector<1x1xf32>,
    } else {
    }
    %c0_i32_2 = arith.constant 0 : i32
    %6 = arith.cmpi eq, %arg1, %c0_i32_2 : i32
    %7 = arith.extui %6 : i1 to i32
    %c0_i32_3 = arith.constant 0 : i32
    %8 = arith.cmpi ne, %7, %c0_i32_3 : i32
    scf.if %8 {
      %cst_38 = arith.constant -1.000000e+30 : f32
      %81 = vector.broadcast %cst_38 : f32 to vector<128x1xf32>
      %c0_39 = arith.constant 0 : index
      %c0_40 = arith.constant 0 : index
      %82 = vector.load %arg6[%c0_39, %c0_40] : memref<128x1xf32, #tpu.memory_space<vmem>>, vector<128x1xf32>
      tpu.vector_store %arg6[%c0_39, %c0_40], %81 {strides = array<i32>} : memref<128x1xf32, #tpu.memory_space<vmem>>, vector<128x1xf32>,
      %cst_41 = arith.constant 0.000000e+00 : f32
      %83 = vector.broadcast %cst_41 : f32 to vector<128x1xf32>
      %c0_42 = arith.constant 0 : index
      %c0_43 = arith.constant 0 : index
      %84 = vector.load %arg7[%c0_42, %c0_43] : memref<128x1xf32, #tpu.memory_space<vmem>>, vector<128x1xf32>
      tpu.vector_store %arg7[%c0_42, %c0_43], %83 {strides = array<i32>} : memref<128x1xf32, #tpu.memory_space<vmem>>, vector<128x1xf32>,
    } else {
    }
    %c0_4 = arith.constant 0 : index
    %c0_5 = arith.constant 0 : index
    %9 = vector.load %arg3[%c0_4, %c0_5] : memref<128x128xbf16, #tpu.memory_space<vmem>>, vector<128x128xbf16>
    %c0_6 = arith.constant 0 : index
    %c0_7 = arith.constant 0 : index
    %10 = vector.load %arg4[%c0_6, %c0_7] : memref<128x128xbf16, #tpu.memory_space<vmem>>, vector<128x128xbf16>
    %cst = arith.constant dense<0.000000e+00> : vector<128x128xf32>
    %11 = tpu.matmul %9, %10, %cst {dimension_numbers = #tpu.dot_dimension_numbers<[1], [1], [0], [0], [0, 0, 1, 0], [], []>} : vector<128x128xbf16>, vector<128x128xbf16>, vector<128x128xf32> -> vector<128x128xf32>
    %12 = vector.broadcast %0 : f32 to vector<128x128xf32>
    %13 = arith.mulf %11, %12 : vector<128x128xf32>
    %cst_8 = arith.constant dense<0xFF800000> : vector<128xf32>
    %14 = vector.multi_reduction <maximumf>, %13, %cst_8 [1] : vector<128x128xf32> to vector<128xf32>
    %15 = vector.shape_cast %14 : vector<128xf32> to vector<128x1xf32>
    %cst_9 = arith.constant dense<0xFF800000> : vector<128xf32>
    %16 = vector.multi_reduction <maximumf>, %13, %cst_9 [0] : vector<128x128xf32> to vector<128xf32>
    %17 = vector.shape_cast %16 : vector<128xf32> to vector<1x128xf32>
    %c0_10 = arith.constant 0 : index
    %c0_11 = arith.constant 0 : index
    %18 = vector.load %arg6[%c0_10, %c0_11] : memref<128x1xf32, #tpu.memory_space<vmem>>, vector<128x1xf32>
    %19 = arith.maximumf %18, %15 : vector<128x1xf32>
    %c128_i32 = arith.constant 128 : i32
    %20 = arith.muli %arg1, %c128_i32 : i32
    %21 = tpu.assume_multiple %20, 128 : i32
    %c0_12 = arith.constant 0 : index
    %22 = arith.index_cast %21 : i32 to index
    %23 = vector.load %arg8[%c0_12, %22] : memref<1x128xf32, #tpu.memory_space<vmem>>, vector<1x128xf32>
    %c0_13 = arith.constant 0 : index
    %24 = arith.index_cast %21 : i32 to index
    %25 = vector.load %arg9[%c0_13, %24] : memref<1x128xf32, #tpu.memory_space<vmem>>, vector<1x128xf32>
    %26 = arith.maximumf %23, %17 : vector<1x128xf32>
    %c0_14 = arith.constant 0 : index
    %c0_15 = arith.constant 0 : index
    %27 = vector.load %arg6[%c0_14, %c0_15] : memref<128x1xf32, #tpu.memory_space<vmem>>, vector<128x1xf32>
    %28 = arith.subf %27, %19 : vector<128x1xf32>
    %29 = math.exp %28 : vector<128x1xf32>
    %30 = arith.subf %23, %26 : vector<1x128xf32>
    %31 = math.exp %30 : vector<1x128xf32>
    %32 = vector.broadcast %19 : vector<128x1xf32> to vector<128x128xf32>
    %33 = arith.subf %13, %32 : vector<128x128xf32>
    %34 = math.exp %33 : vector<128x128xf32>
    %cst_16 = arith.constant dense<0.000000e+00> : vector<128xf32>
    %35 = vector.multi_reduction <add>, %34, %cst_16 [1] : vector<128x128xf32> to vector<128xf32>
    %36 = vector.shape_cast %35 : vector<128xf32> to vector<128x1xf32>
    %cst_17 = arith.constant dense<0xFF800000> : vector<1xf32>
    %37 = vector.multi_reduction <maximumf>, %19, %cst_17 [0] : vector<128x1xf32> to vector<1xf32>
    %38 = vector.shape_cast %37 : vector<1xf32> to vector<1x1xf32>
    %39 = vector.broadcast %38 : vector<1x1xf32> to vector<128x1xf32>
    %40 = arith.subf %19, %39 : vector<128x1xf32>
    %41 = math.exp %40 : vector<128x1xf32>
    %42 = vector.broadcast %38 : vector<1x1xf32> to vector<1x128xf32>
    %43 = arith.subf %42, %26 : vector<1x128xf32>
    %cst_18 = arith.constant 8.000000e+01 : f32
    %44 = vector.broadcast %cst_18 : f32 to vector<1x128xf32>
    %45 = arith.minimumf %43, %44 : vector<1x128xf32>
    %46 = math.exp %45 : vector<1x128xf32>
    %47 = vector.broadcast %41 : vector<128x1xf32> to vector<128x128xf32>
    %48 = arith.mulf %34, %47 : vector<128x128xf32>
    %cst_19 = arith.constant dense<0.000000e+00> : vector<128xf32>
    %49 = vector.multi_reduction <add>, %48, %cst_19 [0] : vector<128x128xf32> to vector<128xf32>
    %50 = vector.shape_cast %49 : vector<128xf32> to vector<1x128xf32>
    %51 = arith.mulf %50, %46 : vector<1x128xf32>
    %c0_20 = arith.constant 0 : index
    %c0_21 = arith.constant 0 : index
    %52 = vector.load %arg7[%c0_20, %c0_21] : memref<128x1xf32, #tpu.memory_space<vmem>>, vector<128x1xf32>
    %53 = arith.mulf %29, %52 : vector<128x1xf32>
    %54 = arith.addf %53, %36 : vector<128x1xf32>
    %c0_22 = arith.constant 0 : index
    %c0_23 = arith.constant 0 : index
    %55 = vector.load %arg7[%c0_22, %c0_23] : memref<128x1xf32, #tpu.memory_space<vmem>>, vector<128x1xf32>
    tpu.vector_store %arg7[%c0_22, %c0_23], %54 {strides = array<i32>} : memref<128x1xf32, #tpu.memory_space<vmem>>, vector<128x1xf32>,
    %c0_24 = arith.constant 0 : index
    %c0_25 = arith.constant 0 : index
    %56 = vector.load %arg6[%c0_24, %c0_25] : memref<128x1xf32, #tpu.memory_space<vmem>>, vector<128x1xf32>
    tpu.vector_store %arg6[%c0_24, %c0_25], %19 {strides = array<i32>} : memref<128x1xf32, #tpu.memory_space<vmem>>, vector<128x1xf32>,
    %57 = arith.mulf %31, %25 : vector<1x128xf32>
    %58 = arith.addf %57, %51 : vector<1x128xf32>
    %c0_26 = arith.constant 0 : index
    %59 = arith.index_cast %21 : i32 to index
    %60 = vector.load %arg9[%c0_26, %59] : memref<1x128xf32, #tpu.memory_space<vmem>>, vector<1x128xf32>
    tpu.vector_store %arg9[%c0_26, %59], %58 {strides = array<i32>} : memref<1x128xf32, #tpu.memory_space<vmem>>, vector<1x128xf32>,
    %c0_27 = arith.constant 0 : index
    %61 = arith.index_cast %21 : i32 to index
    %62 = vector.load %arg8[%c0_27, %61] : memref<1x128xf32, #tpu.memory_space<vmem>>, vector<1x128xf32>
    tpu.vector_store %arg8[%c0_27, %61], %26 {strides = array<i32>} : memref<1x128xf32, #tpu.memory_space<vmem>>, vector<1x128xf32>,
    %c128_i32_28 = arith.constant 128 : i32
    %63 = arith.muli %arg1, %c128_i32_28 : i32
    %c128_i32_29 = arith.constant 128 : i32
    %64 = arith.muli %arg0, %c128_i32_29 : i32
    %65 = arith.cmpi sge, %63, %64 : i32
    %c128_i32_30 = arith.constant 128 : i32
    %66 = arith.muli %arg1, %c128_i32_30 : i32
    %c1_i32 = arith.constant 1 : i32
    %67 = arith.addi %arg0, %c1_i32 : i32
    %c128_i32_31 = arith.constant 128 : i32
    %68 = arith.muli %67, %c128_i32_31 : i32
    %69 = arith.cmpi slt, %66, %68 : i32
    %70 = arith.andi %65, %69 : i1
    %71 = arith.extui %70 : i1 to i32
    %c0_i32_32 = arith.constant 0 : i32
    %72 = arith.cmpi ne, %71, %c0_i32_32 : i32
    scf.if %72 {
      %81 = tpu.iota {dimensions = array<i32: 0>} : vector<128x128xi32>
      %82 = tpu.iota {dimensions = array<i32: 1>} : vector<128x128xi32>
      %c128_i32_38 = arith.constant 128 : i32
      %83 = arith.muli %arg0, %c128_i32_38 : i32
      %84 = vector.broadcast %83 : i32 to vector<128x128xi32>
      %85 = arith.addi %84, %81 : vector<128x128xi32>
      %c128_i32_39 = arith.constant 128 : i32
      %86 = arith.muli %arg1, %c128_i32_39 : i32
      %87 = vector.broadcast %86 : i32 to vector<128x128xi32>
      %88 = arith.addi %87, %82 : vector<128x128xi32>
      %89 = arith.cmpi eq, %85, %88 : vector<128x128xi32>
      %cst_40 = arith.constant 0.000000e+00 : f32
      %90 = vector.broadcast %cst_40 : f32 to vector<128x128xf32>
      %91 = arith.select %89, %13, %90 : vector<128x128xi1>, vector<128x128xf32>
      %cst_41 = arith.constant dense<0.000000e+00> : vector<128xf32>
      %92 = vector.multi_reduction <add>, %91, %cst_41 [1] : vector<128x128xf32> to vector<128xf32>
      %93 = vector.shape_cast %92 : vector<128xf32> to vector<128x1xf32>
      %cst_42 = arith.constant dense<0.000000e+00> : vector<1xf32>
      %94 = vector.multi_reduction <add>, %93, %cst_42 [0] : vector<128x1xf32> to vector<1xf32>
      %95 = vector.shape_cast %94 : vector<1xf32> to vector<1x1xf32>
      %c0_43 = arith.constant 0 : index
      %c0_44 = arith.constant 0 : index
      %96 = vector.load %arg10[%c0_43, %c0_44] : memref<1x1xf32, #tpu.memory_space<vmem>>, vector<1x1xf32>
      %cst_45 = arith.constant 2.000000e+00 : f32
      %97 = vector.broadcast %cst_45 : f32 to vector<1x1xf32>
      %98 = arith.mulf %97, %95 : vector<1x1xf32>
      %99 = arith.subf %96, %98 : vector<1x1xf32>
      %c0_46 = arith.constant 0 : index
      %c0_47 = arith.constant 0 : index
      %100 = vector.load %arg10[%c0_46, %c0_47] : memref<1x1xf32, #tpu.memory_space<vmem>>, vector<1x1xf32>
      tpu.vector_store %arg10[%c0_46, %c0_47], %99 {strides = array<i32>} : memref<1x1xf32, #tpu.memory_space<vmem>>, vector<1x1xf32>,
    } else {
    }
    %c0_i32_33 = arith.constant 0 : i32
    %73 = arith.cmpi eq, %arg1, %c0_i32_33 : i32
    %74 = arith.extui %73 : i1 to i32
    %c0_i32_34 = arith.constant 0 : i32
    %75 = arith.cmpi ne, %74, %c0_i32_34 : i32
    scf.if %75 {
      %c0_38 = arith.constant 0 : index
      %c0_39 = arith.constant 0 : index
      %81 = vector.load %arg7[%c0_38, %c0_39] : memref<128x1xf32, #tpu.memory_space<vmem>>, vector<128x1xf32>
      %c0_40 = arith.constant 0 : index
      %c0_41 = arith.constant 0 : index
      %82 = vector.load %arg6[%c0_40, %c0_41] : memref<128x1xf32, #tpu.memory_space<vmem>>, vector<128x1xf32>
      %cst_42 = arith.constant 0.000000e+00 : f32
      %83 = vector.broadcast %cst_42 : f32 to vector<128x1xf32>
      %84 = arith.subf %83, %82 : vector<128x1xf32>
      %85 = math.exp %84 : vector<128x1xf32>
      %cst_43 = arith.constant 1.200000e+02 : f32
      %86 = vector.broadcast %cst_43 : f32 to vector<128x1xf32>
      %87 = arith.mulf %86, %85 : vector<128x1xf32>
      %88 = arith.subf %81, %87 : vector<128x1xf32>
      %cst_44 = arith.constant 1.000000e-30 : f32
      %89 = vector.broadcast %cst_44 : f32 to vector<128x1xf32>
      %90 = arith.maximumf %88, %89 : vector<128x1xf32>
      %c0_45 = arith.constant 0 : index
      %c0_46 = arith.constant 0 : index
      %91 = vector.load %arg6[%c0_45, %c0_46] : memref<128x1xf32, #tpu.memory_space<vmem>>, vector<128x1xf32>
      %92 = math.log %90 : vector<128x1xf32>
      %93 = arith.addf %91, %92 : vector<128x1xf32>
      %94 = tpu.iota {dimensions = array<i32: 0>} : vector<128x1xi32>
      %c128_i32_47 = arith.constant 128 : i32
      %95 = arith.muli %arg0, %c128_i32_47 : i32
      %96 = vector.broadcast %95 : i32 to vector<128x1xi32>
      %97 = arith.addi %94, %96 : vector<128x1xi32>
      %c8_i32 = arith.constant 8 : i32
      %98 = vector.broadcast %c8_i32 : i32 to vector<128x1xi32>
      %99 = arith.cmpi slt, %97, %98 : vector<128x1xi32>
      %cst_48 = arith.constant 0.000000e+00 : f32
      %100 = vector.broadcast %cst_48 : f32 to vector<128x1xf32>
      %101 = arith.select %99, %93, %100 : vector<128x1xi1>, vector<128x1xf32>
      %c0_49 = arith.constant 0 : index
      %c0_50 = arith.constant 0 : index
      %102 = vector.load %arg10[%c0_49, %c0_50] : memref<1x1xf32, #tpu.memory_space<vmem>>, vector<1x1xf32>
      %cst_51 = arith.constant dense<0.000000e+00> : vector<1xf32>
      %103 = vector.multi_reduction <add>, %101, %cst_51 [0] : vector<128x1xf32> to vector<1xf32>
      %104 = vector.shape_cast %103 : vector<1xf32> to vector<1x1xf32>
      %105 = arith.addf %102, %104 : vector<1x1xf32>
      %c0_52 = arith.constant 0 : index
      %c0_53 = arith.constant 0 : index
      %106 = vector.load %arg10[%c0_52, %c0_53] : memref<1x1xf32, #tpu.memory_space<vmem>>, vector<1x1xf32>
      tpu.vector_store %arg10[%c0_52, %c0_53], %105 {strides = array<i32>} : memref<1x1xf32, #tpu.memory_space<vmem>>, vector<1x1xf32>,
    } else {
    }
    %c0_i32_35 = arith.constant 0 : i32
    %76 = arith.cmpi eq, %arg0, %c0_i32_35 : i32
    %c0_i32_36 = arith.constant 0 : i32
    %77 = arith.cmpi eq, %arg1, %c0_i32_36 : i32
    %78 = arith.andi %76, %77 : i1
    %79 = arith.extui %78 : i1 to i32
    %c0_i32_37 = arith.constant 0 : i32
    %80 = arith.cmpi ne, %79, %c0_i32_37 : i32
    scf.if %80 {
      %c0_38 = arith.constant 0 : index
      %c0_39 = arith.constant 0 : index
      %81 = vector.load %arg9[%c0_38, %c0_39] : memref<1x128xf32, #tpu.memory_space<vmem>>, vector<1x128xf32>
      %c0_40 = arith.constant 0 : index
      %c0_41 = arith.constant 0 : index
      %82 = vector.load %arg8[%c0_40, %c0_41] : memref<1x128xf32, #tpu.memory_space<vmem>>, vector<1x128xf32>
      %cst_42 = arith.constant 0.000000e+00 : f32
      %83 = vector.broadcast %cst_42 : f32 to vector<1x128xf32>
      %84 = arith.subf %83, %82 : vector<1x128xf32>
      %85 = math.exp %84 : vector<1x128xf32>
      %cst_43 = arith.constant 1.200000e+02 : f32
      %86 = vector.broadcast %cst_43 : f32 to vector<1x128xf32>
      %87 = arith.mulf %86, %85 : vector<1x128xf32>
      %88 = arith.subf %81, %87 : vector<1x128xf32>
      %cst_44 = arith.constant 1.000000e-30 : f32
      %89 = vector.broadcast %cst_44 : f32 to vector<1x128xf32>
      %90 = arith.maximumf %88, %89 : vector<1x128xf32>
      %c0_45 = arith.constant 0 : index
      %c0_46 = arith.constant 0 : index
      %91 = vector.load %arg8[%c0_45, %c0_46] : memref<1x128xf32, #tpu.memory_space<vmem>>, vector<1x128xf32>
      %92 = math.log %90 : vector<1x128xf32>
      %93 = arith.addf %91, %92 : vector<1x128xf32>
      %94 = tpu.iota {dimensions = array<i32: 1>} : vector<1x128xi32>
      %c8_i32 = arith.constant 8 : i32
      %95 = vector.broadcast %c8_i32 : i32 to vector<1x128xi32>
      %96 = arith.cmpi slt, %94, %95 : vector<1x128xi32>
      %cst_47 = arith.constant 0.000000e+00 : f32
      %97 = vector.broadcast %cst_47 : f32 to vector<1x128xf32>
      %98 = arith.select %96, %93, %97 : vector<1x128xi1>, vector<1x128xf32>
      %c0_48 = arith.constant 0 : index
      %c0_49 = arith.constant 0 : index
      %99 = vector.load %arg10[%c0_48, %c0_49] : memref<1x1xf32, #tpu.memory_space<vmem>>, vector<1x1xf32>
      %cst_50 = arith.constant dense<0.000000e+00> : vector<1xf32>
      %100 = vector.multi_reduction <add>, %98, %cst_50 [1] : vector<1x128xf32> to vector<1xf32>
      %101 = vector.shape_cast %100 : vector<1xf32> to vector<1x1xf32>
      %102 = arith.addf %99, %101 : vector<1x1xf32>
      %cst_51 = arith.constant 6.250000e-02 : f32
      %103 = vector.broadcast %cst_51 : f32 to vector<1x1xf32>
      %104 = arith.mulf %102, %103 : vector<1x1xf32>
      %c0_52 = arith.constant 0 : index
      %c0_53 = arith.constant 0 : index
      %105 = vector.load %arg5[%c0_52, %c0_53] : memref<1x1xf32, #tpu.memory_space<vmem>>, vector<1x1xf32>
      tpu.vector_store %arg5[%c0_52, %c0_53], %104 {strides = array<i32>} : memref<1x1xf32, #tpu.memory_space<vmem>>, vector<1x1xf32>,
    } else {
    }
    return
  }
  func.func @transform_0(%arg0: i32, %arg1: i32, %arg2: memref<1xf32, #tpu.memory_space<smem>>) -> (i32, i32) {
    %c0_i32 = arith.constant 0 : i32
    %c0_i32_0 = arith.constant 0 : i32
    return %arg0, %c0_i32 : i32, i32
  }
  func.func @transform_1(%arg0: i32, %arg1: i32, %arg2: memref<1xf32, #tpu.memory_space<smem>>) -> (i32, i32) {
    %c0_i32 = arith.constant 0 : i32
    %c0_i32_0 = arith.constant 0 : i32
    return %arg1, %c0_i32 : i32, i32
  }
  func.func @transform_2(%arg0: i32, %arg1: i32, %arg2: memref<1xf32, #tpu.memory_space<smem>>) -> (i32, i32) {
    %c0_i32 = arith.constant 0 : i32
    %c0_i32_0 = arith.constant 0 : i32
    %c0_i32_1 = arith.constant 0 : i32
    return %c0_i32, %c0_i32_0 : i32, i32
  }
}

</mosaic_0001>

<bundles_post_ra>
// kernel: tpu_custom_call.1
= control target key start
LH: loop header
LB: loop body
LE: loop exit
PB: predicated region body
PF: predicated region fallthrough
CT: control target
= control target key end

     0   :  { %9 = vsyncpa [#allocation10], 0  ;;  %s2290_s0 = inlined_call_operand.<no memory space> [shape: f32[1], index: 0, kind: input, shape index: {}]   ;;  %s2291_s1 = inlined_call_operand.hbm [shape: bf16[128,128], index: 1, kind: input, shape index: {}]   ;;  %s2292_s2 = inlined_call_operand.hbm [shape: bf16[128,128], index: 2, kind: input, shape index: {}]   ;;  %s2293_s3 = inlined_call_operand.hbm [shape: f32[1,1], index: 3, kind: output, shape index: {}]  }
   0x1   :  { %10 = vsyncpa [#allocation13], 0 }
   0x2   :  { %11 = vsyncpa [#allocation11], 0  ;;  %s16_s14 = sshll.u32 %s2291_s1, 4  ;;  %s1658_s15 = smov [#allocation9]   ;;  %s17_s14 = int_to_ptr.hbm [resolvable:$true] %s16_s14 }
   0x3   :  { %s18_s16 = sshll.u32 %s1658_s15, 4  ;;  %s29_s19 = sshll.u32 %s2292_s2, 4  ;;  %s19_s16 = int_to_ptr.vmem [resolvable:$true] %s18_s16  ;;  %s30_s19 = int_to_ptr.hbm [resolvable:$true] %s29_s19 }
   0x4   :  { %s1659_s20 = smov 64   ;;  %s1660_s21 = smov 4  }
   0x5   :  { %24 = dma.hbm_to_vmem [thread:$0]  %s17_s14, 1024, %s19_s16, [#allocation10], %s1659_s20, %s1659_s20, %s1660_s21  }
   0x6   :  { %s1661_s22 = smov [#allocation12]  }
   0x7   :  { %s31_s23 = sshll.u32 %s1661_s22, 4  ;;  %s32_s23 = int_to_ptr.vmem [resolvable:$true] %s31_s23 }
   0x8   :  { %37 = dma.hbm_to_vmem [thread:$0]  %s30_s19, 1024, %s32_s23, [#allocation13], %s1659_s20, %s1659_s20, %s1660_s21  }
   0x9   :  { %1652 = dma.done.wait [#allocation10], 1024  }
   0xa   :  { %1653 = vsyncadd [#allocation10], 4294966272 }
   0xb   :  { %1654 = dma.done.wait [#allocation13], 1024  }
   0xc   :  { %1655 = vsyncadd [#allocation13], 4294966272  ;;  %v1436_v0 = vld [vmem:[#allocation12 + $0x38] sm:$0xff]  ;;  %v1435_v1 = vld [vmem:[#allocation12 + $0x30] sm:$0xff]  ;;  %v897_v16 = vlaneseq  ;;  %v1700_v20 = vstv %s2290_s0  ;;  %v1662_v35 = vmov -1e+30  }
   0xd   :  { %221 = vmatpush.bf16.xpose.msra.mxu0 %v1436_v0  ;;  %1437 = vmatpush.bf16.xpose.msra.mxu1 %v1436_v0  ;;  %v1434_v2 = vld [vmem:[#allocation12 + $0x28] sm:$0xff]  ;;  %v1433_v3 = vld [vmem:[#allocation12 + $0x20] sm:$0xff]  ;;  %v1432_v4 = vld [vmem:[#allocation12 + $0x18] sm:$0xff]  ;;  %53 = vst [vmem:[#allocation4] sm:$0x1] %v1662_v35  ;;  %vm60_vm5 = vcmask 7168  }
   0xe   :  { %1438 = vmatpush.bf16.xpose.msra.mxu2 %v1436_v0  ;;  %1439 = vmatpush.bf16.xpose.msra.mxu3 %v1436_v0  ;;  %v1431_v5 = vld [vmem:[#allocation12 + $0x10] sm:$0xff]  ;;  %v1430_v6 = vld [vmem:[#allocation12 + $0x8] sm:$0xff]  ;;  %v1429_v7 = vld [vmem:[#allocation12] sm:$0xff]  ;;  %v1692_v17 = vshrl.u32 %v897_v16, 7  ;;  %v1695_v19 = vand.u32 127, %v897_v16  ;;  %65 = vst.msk [vmem:[#allocation2 + $0x20] sm:$0xff] %vm60_vm5, %v1662_v35 }
   0xf   :  { %v1421_v8 = vld [vmem:[#allocation9] sm:$0xff]  ;;  %v1423_v9 = vld [vmem:[#allocation9 + $0x10] sm:$0xff]  ;;  %v1422_v12 = vld [vmem:[#allocation9 + $0x8] sm:$0xff]  ;;  %61 = vst.msk [vmem:[#allocation2] sm:$0xff] %vm60_vm5, %v1662_v35  ;;  %s1665_s0 = smov [#allocation14]   ;;  %s1344_s27 = sshll.u32 %s2293_s3, 4  ;;  %s1345_s27 = int_to_ptr.hbm [resolvable:$true] %s1344_s27 }
  0x10   :  { %v1425_v10 = vld [vmem:[#allocation9 + $0x20] sm:$0xff]  ;;  %v1427_v11 = vld [vmem:[#allocation9 + $0x30] sm:$0xff]  ;;  %v1424_v13 = vld [vmem:[#allocation9 + $0x18] sm:$0xff]  ;;  %v902_v18 = vadd.s32 32, %v1692_v17  ;;  %v899_v26 = vadd.s32 8, %v1692_v17  ;;  %vm935_vm1 = vcmp.eq.s32.totalorder %v1692_v17, %v1695_v19  ;;  %v903_v42 = vadd.s32 40, %v1692_v17 }
  0x11   :  { %v1426_v14 = vld [vmem:[#allocation9 + $0x28] sm:$0xff]  ;;  %v1428_v15 = vld [vmem:[#allocation9 + $0x38] sm:$0xff]  ;;  %v904_v52 = vadd.s32 48, %v1692_v17  ;;  %v901_v16 = vadd.s32 24, %v1692_v17  ;;  %62 = vst.msk [vmem:[#allocation2 + $0x8] sm:$0xff] %vm60_vm5, %v1662_v35  ;;  %s1342_s24 = sshll.u32 %s1665_s0, 4  ;;  %s1343_s24 = int_to_ptr.vmem [resolvable:$true] %s1342_s24 }
  0x12   :  { %vm939_vm0 = vcmp.eq.s32.totalorder %v902_v18, %v1695_v19  ;;  %vm936_vm2 = vcmp.eq.s32.totalorder %v899_v26, %v1695_v19  ;;  %vm940_vm3 = vcmp.eq.s32.totalorder %v903_v42, %v1695_v19  ;;  %63 = vst.msk [vmem:[#allocation2 + $0x10] sm:$0xff] %vm60_vm5, %v1662_v35 }
  0x13   :  { %vm941_vm4 = vcmp.eq.s32.totalorder %v904_v52, %v1695_v19  ;;  %vm938_vm7 = vcmp.eq.s32.totalorder %v901_v16, %v1695_v19  ;;  %64 = vst.msk [vmem:[#allocation2 + $0x18] sm:$0xff] %vm60_vm5, %v1662_v35 }
  0x14   :  { %66 = vst.msk [vmem:[#allocation2 + $0x28] sm:$0xff] %vm60_vm5, %v1662_v35 }
  0x15   :  { %222 = vmatpush.bf16.xpose.msra.mxu0 %v1435_v1  ;;  %1440 = vmatpush.bf16.xpose.msra.mxu1 %v1435_v1  ;;  %67 = vst.msk [vmem:[#allocation2 + $0x30] sm:$0xff] %vm60_vm5, %v1662_v35 }
  0x16   :  { %1441 = vmatpush.bf16.xpose.msra.mxu2 %v1435_v1  ;;  %1442 = vmatpush.bf16.xpose.msra.mxu3 %v1435_v1  ;;  %68 = vst.msk [vmem:[#allocation2 + $0x38] sm:$0xff] %vm60_vm5, %v1662_v35 }
  0x17   :  { %69 = vst.msk [vmem:[#allocation2 + $0x40] sm:$0xff] %vm60_vm5, %v1662_v35 }
  0x18   :  { %70 = vst.msk [vmem:[#allocation2 + $0x48] sm:$0xff] %vm60_vm5, %v1662_v35 }
  0x19   :  { %71 = vst.msk [vmem:[#allocation2 + $0x50] sm:$0xff] %vm60_vm5, %v1662_v35 }
  0x1a   :  { %72 = vst.msk [vmem:[#allocation2 + $0x58] sm:$0xff] %vm60_vm5, %v1662_v35 }
  0x1b   :  { %73 = vst.msk [vmem:[#allocation2 + $0x60] sm:$0xff] %vm60_vm5, %v1662_v35 }
  0x1c   :  { %74 = vst.msk [vmem:[#allocation2 + $0x68] sm:$0xff] %vm60_vm5, %v1662_v35 }
  0x1d   :  { %223 = vmatpush.bf16.xpose.msra.mxu0 %v1434_v2  ;;  %1443 = vmatpush.bf16.xpose.msra.mxu1 %v1434_v2  ;;  %75 = vst.msk [vmem:[#allocation2 + $0x70] sm:$0xff] %vm60_vm5, %v1662_v35 }
  0x1e   :  { %1444 = vmatpush.bf16.xpose.msra.mxu2 %v1434_v2  ;;  %1445 = vmatpush.bf16.xpose.msra.mxu3 %v1434_v2  ;;  %76 = vst.msk [vmem:[#allocation2 + $0x78] sm:$0xff] %vm60_vm5, %v1662_v35 }
  0x25   :  { %224 = vmatpush.bf16.xpose.msra.mxu0 %v1433_v3  ;;  %1446 = vmatpush.bf16.xpose.msra.mxu1 %v1433_v3 }
  0x26   :  { %1447 = vmatpush.bf16.xpose.msra.mxu2 %v1433_v3  ;;  %1448 = vmatpush.bf16.xpose.msra.mxu3 %v1433_v3 }
  0x2d   :  { %225 = vmatpush.bf16.xpose.msra.mxu0 %v1432_v4  ;;  %1449 = vmatpush.bf16.xpose.msra.mxu1 %v1432_v4 }
  0x2e   :  { %1450 = vmatpush.bf16.xpose.msra.mxu2 %v1432_v4  ;;  %1451 = vmatpush.bf16.xpose.msra.mxu3 %v1432_v4 }
  0x35   :  { %226 = vmatpush.bf16.xpose.msra.mxu0 %v1431_v5  ;;  %1452 = vmatpush.bf16.xpose.msra.mxu1 %v1431_v5 }
  0x36   :  { %1453 = vmatpush.bf16.xpose.msra.mxu2 %v1431_v5  ;;  %1454 = vmatpush.bf16.xpose.msra.mxu3 %v1431_v5 }
  0x3d   :  { %227 = vmatpush.bf16.xpose.msra.mxu0 %v1430_v6  ;;  %1455 = vmatpush.bf16.xpose.msra.mxu1 %v1430_v6 }
  0x3e   :  { %1456 = vmatpush.bf16.xpose.msra.mxu2 %v1430_v6  ;;  %1457 = vmatpush.bf16.xpose.msra.mxu3 %v1430_v6 }
  0x45   :  { %228 = vmatpush.bf16.xpose.msra.mxu0 %v1429_v7  ;;  %1458 = vmatpush.bf16.xpose.msra.mxu1 %v1429_v7 }
  0x46   :  { %1459 = vmatpush.bf16.xpose.msra.mxu2 %v1429_v7  ;;  %1460 = vmatpush.bf16.xpose.msra.mxu3 %v1429_v7 }
  0x4c   :  { %229 = vmatmul.bf16.vlgmr.msra.gmra.mxu0 %v1421_v8  ;;  %239 = vmatmul.bf16.vlgmr.msra.gmra.mxu1 %v1423_v9 }
  0x4d   :  { %249 = vmatmul.bf16.vlgmr.msra.gmra.mxu2 %v1425_v10  ;;  %259 = vmatmul.bf16.vlgmr.msra.gmra.mxu3 %v1427_v11 }
  0x5c   :  { %234 = vmatmul.bf16.gmra.mxu0 %v1422_v12  ;;  %244 = vmatmul.bf16.gmra.mxu1 %v1424_v13  ;;  %v2294_v13 = vmov 0.0  }
  0x5d   :  { %254 = vmatmul.bf16.gmra.mxu2 %v1426_v14  ;;  %264 = vmatmul.bf16.gmra.mxu3 %v1428_v15  ;;  %54 = vst [vmem:[#allocation5] sm:$0x1] %v2294_v13  ;;  %v900_v15 = vadd.s32 16, %v1692_v17 }
  0x5e   :  { %77 = vst.msk [vmem:[#allocation3] sm:$0xff] %vm60_vm5, %v2294_v13 }
  0x5f   :  { %vm937_vm6 = vcmp.eq.s32.totalorder %v900_v15, %v1695_v19  ;;  %78 = vst.msk [vmem:[#allocation3 + $0x8] sm:$0xff] %vm60_vm5, %v2294_v13 }
  0x60   :  { %79 = vst.msk [vmem:[#allocation3 + $0x10] sm:$0xff] %vm60_vm5, %v2294_v13 }
  0x61   :  { %80 = vst.msk [vmem:[#allocation3 + $0x18] sm:$0xff] %vm60_vm5, %v2294_v13 }
  0x62   :  { %81 = vst.msk [vmem:[#allocation3 + $0x20] sm:$0xff] %vm60_vm5, %v2294_v13 }
  0x63   :  { %82 = vst.msk [vmem:[#allocation3 + $0x28] sm:$0xff] %vm60_vm5, %v2294_v13 }
  0x64   :  { %83 = vst.msk [vmem:[#allocation3 + $0x30] sm:$0xff] %vm60_vm5, %v2294_v13 }
  0x65   :  { %84 = vst.msk [vmem:[#allocation3 + $0x38] sm:$0xff] %vm60_vm5, %v2294_v13 }
  0x66   :  { %85 = vst.msk [vmem:[#allocation3 + $0x40] sm:$0xff] %vm60_vm5, %v2294_v13 }
  0x67   :  { %86 = vst.msk [vmem:[#allocation3 + $0x48] sm:$0xff] %vm60_vm5, %v2294_v13 }
  0x68   :  { %87 = vst.msk [vmem:[#allocation3 + $0x50] sm:$0xff] %vm60_vm5, %v2294_v13 }
  0x69   :  { %88 = vst.msk [vmem:[#allocation3 + $0x58] sm:$0xff] %vm60_vm5, %v2294_v13 }
  0x6a   :  { %89 = vst.msk [vmem:[#allocation3 + $0x60] sm:$0xff] %vm60_vm5, %v2294_v13 }
  0x6b   :  { %90 = vst.msk [vmem:[#allocation3 + $0x68] sm:$0xff] %vm60_vm5, %v2294_v13 }
  0x6c   :  { %91 = vst.msk [vmem:[#allocation3 + $0x70] sm:$0xff] %vm60_vm5, %v2294_v13 }
  0x6d   :  { %92 = vst.msk [vmem:[#allocation3 + $0x78] sm:$0xff] %vm60_vm5, %v2294_v13 }
  0xc9   :  { %v230_v21 = vpop.f32.mrf.mxu0  ;;  %v240_v22 = vpop.f32.mrf.mxu1 }
  0xca   :  { %v1704_v23 = vmul.f32 %v1700_v20, %v230_v21  ;;  %v1707_v24 = vmul.f32 %v1700_v20, %v240_v22 }
  0xcc   :  { %295 = vmax.xlane.f32.xlu2 %v1707_v24  ;;  %287 = vmax.xlane.f32.xlu0 %v1704_v23  ;;  %v955_v25 = vsel %vm939_vm0, %v1707_v24, 0.0  ;;  %v951_v33 = vsel %vm935_vm1, %v1704_v23, 0.0  ;;  %v319_v58 = vmax.f32 %v1704_v23, %v1707_v24  ;;  %vm1326_vm1 = vcmp.lt.s32.totalorder %v1695_v19, 8 }
  0xcd   :  { %975 = vadd.xlane.f32.xlu1 %v955_v25 }
  0xd0   :  { %v250_v27 = vpop.f32.mrf.mxu2  ;;  %v260_v28 = vpop.f32.mrf.mxu3 }
  0xd1   :  { %v1716_v29 = vmul.f32 %v1700_v20, %v260_v28  ;;  %v232_v30 = vpop.f32.mrf.mxu0  ;;  %v242_v31 = vpop.f32.mrf.mxu1  ;;  %v1727_v40 = vmul.f32 %v1700_v20, %v250_v27  ;;  %v1822_v28 = vld [vmem:[#allocation4] sm:$0x1] }
  0xd2   :  { %v1720_v32 = vmul.f32 %v1700_v20, %v232_v30  ;;  %v1737_v43 = vmul.f32 %v1700_v20, %v242_v31  ;;  %v906_v31 = vadd.s32 64, %v1692_v17 }
  0xd3   :  { %v323_v1 = vmax.f32 %v319_v58, %v1727_v40 }
  0xd4   :  { %311 = vmax.xlane.f32.xlu0 %v1716_v29  ;;  %967 = vadd.xlane.f32.xlu2 %v951_v33  ;;  %v952_v34 = vsel %vm936_vm2, %v1720_v32, 0.0  ;;  %v956_v51 = vsel %vm940_vm3, %v1737_v43, 0.0  ;;  %v320_v57 = vmax.f32 %v1720_v32, %v1737_v43  ;;  %vm943_vm8 = vcmp.eq.s32.totalorder %v906_v31, %v1695_v19 }
  0xd5   :  { %969 = vadd.xlane.f32.xlu1 %v952_v34  ;;  %v327_v8 = vmax.f32 %v323_v1, %v1716_v29  ;;  %v959_v33 = vsel %vm943_vm8, %v1727_v40, 0.0  ;;  %v909_v34 = vadd.s32 88, %v1692_v17  ;;  %vm1329_vm2 = vcmask 1040384  }
  0xd6   :  { %vm55_vm3 = vcmask 0  }
  0xd7   :  { %vm946_vm9 = vcmp.eq.s32.totalorder %v909_v34, %v1695_v19  ;;  %v2035_v34 = vld [vmem:[#allocation2 + $0x78] sm:$0xff] }
  0xd8   :  { %v252_v36 = vpop.f32.mrf.mxu2  ;;  %v262_v37 = vpop.f32.mrf.mxu3  ;;  %2309 = vst [vmem:[#allocation24_spill] sm:$0xff] %v2035_v34 }
  0xd9   :  { %v245_v38 = vpop.f32.mrf.mxu1  ;;  %v235_v39 = vpop.f32.mrf.mxu0  ;;  %v1730_v41 = vmul.f32 %v1700_v20, %v262_v37  ;;  %v1747_v50 = vmul.f32 %v1700_v20, %v252_v36  ;;  %v1664_v36 = vmov 0   ;;  %v1880_v37 = vld [vmem:[#allocation2 + $0x20] sm:$0xff] }
  0xda   :  { %v1740_v44 = vmul.f32 %v1700_v20, %v245_v38  ;;  %v1744_v47 = vmul.f32 %v1700_v20, %v235_v39  ;;  %1469 = vset.pattern.permute.xlu1 %v1664_v36  ;;  %1470 = vset.pattern.permute.xlu2 %v1664_v36  ;;  %v1882_v38 = vld [vmem:[#allocation2] sm:$0xff] }
  0xdb   :  { %v324_v59 = vmax.f32 %v320_v57, %v1747_v50  ;;  %1471 = vset.pattern.permute.xlu0 %v1664_v36  ;;  %v1978_v36 = vld [vmem:[#allocation2 + $0x70] sm:$0xff] }
  0xdc   :  { %303 = vmax.xlane.f32.xlu2 %v1727_v40  ;;  %289 = vmax.xlane.f32.xlu0 %v1720_v32  ;;  %v321_v53 = vmax.f32 %v1744_v47, %v1740_v44  ;;  %v957_v4 = vsel %vm941_vm4, %v1740_v44, 0.0  ;;  %v953_v22 = vsel %vm937_vm6, %v1744_v47, 0.0  ;;  %2305 = vst [vmem:[#allocation20_spill] sm:$0xff] %v1978_v36 }
  0xdd   :  { %313 = vmax.xlane.f32.xlu1 %v1730_v41  ;;  %v328_v5 = vmax.f32 %v324_v59, %v1730_v41  ;;  %v1907_v59 = vld [vmem:[#allocation2 + $0x40] sm:$0xff] }
  0xdf   :  { %v331_v10 = vmax.f32 %v327_v8, %v328_v5 }
  0xe0   :  { %v255_v45 = vpop.f32.mrf.mxu2  ;;  %v265_v46 = vpop.f32.mrf.mxu3 }
  0xe1   :  { %v247_v48 = vpop.f32.mrf.mxu1  ;;  %v237_v49 = vpop.f32.mrf.mxu0  ;;  %v1754_v54 = vmul.f32 %v1700_v20, %v255_v45  ;;  %v1772_v61 = vmul.f32 %v1700_v20, %v265_v46 }
  0xe2   :  { %v1757_v55 = vmul.f32 %v1700_v20, %v247_v48  ;;  %v1760_v56 = vmul.f32 %v1700_v20, %v237_v49  ;;  %v1897_v49 = vld [vmem:[#allocation2 + $0x60] sm:$0xff] }
  0xe3   :  { %v325_v60 = vmax.f32 %v321_v53, %v1754_v54 }
  0xe4   :  { %297 = vmax.xlane.f32.xlu2 %v1737_v43  ;;  %977 = vadd.xlane.f32.xlu0 %v956_v51  ;;  %v322_v62 = vmax.f32 %v1760_v56, %v1757_v55  ;;  %v954_v25 = vsel %vm938_vm7, %v1760_v56, 0.0 }
  0xe5   :  { %291 = vmax.xlane.f32.xlu1 %v1744_v47  ;;  %v329_v6 = vmax.f32 %v325_v60, %v1772_v61  ;;  %v1909_v60 = vld [vmem:[#allocation2 + $0x8] sm:$0xff] }
  0xe8   :  { %v257_v63 = vpop.f32.mrf.mxu2  ;;  %v267_v0 = vpop.f32.mrf.mxu3 }
  0xe9   :  { %v1778_v2 = vmul.f32 %v1700_v20, %v257_v63  ;;  %v1781_v3 = vmul.f32 %v1700_v20, %v267_v0 }
  0xeb   :  { %v326_v7 = vmax.f32 %v322_v62, %v1778_v2  ;;  %v962_v35 = vsel %vm946_vm9, %v1778_v2, 0.0  ;;  %v1911_v62 = vld [vmem:[#allocation2 + $0x68] sm:$0xff] }
  0xec   :  { %979 = vadd.xlane.f32.xlu2 %v957_v4  ;;  %305 = vmax.xlane.f32.xlu0 %v1747_v50  ;;  %2303 = vst [vmem:[#allocation18_spill] sm:$0xff] %v1911_v62 }
  0xed   :  { %v330_v9 = vmax.f32 %v326_v7, %v1781_v3  ;;  %307 = vmax.xlane.f32.xlu1 %v1754_v54 }
  0xef   :  { %v332_v11 = vmax.f32 %v329_v6, %v330_v9  ;;  %v1934_v9 = vld [vmem:[#allocation2 + $0x28] sm:$0xff] }
  0xf1   :  { %v333_v12 = vmax.f32 %v331_v10, %v332_v11  ;;  %v1936_v10 = vld [vmem:[#allocation2 + $0x10] sm:$0xff] }
  0xf3   :  { %v334_v14 = vrot.slane %v333_v12, 4 }
  0xf4   :  { %315 = vmax.xlane.f32.xlu2 %v1772_v61  ;;  %299 = vmax.xlane.f32.xlu0 %v1740_v44 }
  0xf5   :  { %293 = vmax.xlane.f32.xlu1 %v1760_v56  ;;  %v335_v18 = vmax.f32 %v333_v12, %v334_v14 }
  0xf7   :  { %v336_v20 = vrot.slane %v335_v18, 2 }
  0xf9   :  { %v337_v21 = vmax.f32 %v335_v18, %v336_v20 }
  0xfb   :  { %v338_v26 = vrot.slane %v337_v21, 1 }
  0xfc   :  { %971 = vadd.xlane.f32.xlu0 %v953_v22  ;;  %973 = vadd.xlane.f32.xlu2 %v954_v25  ;;  %v1958_v22 = vld [vmem:[#allocation2 + $0x50] sm:$0xff] }
  0xfd   :  { %301 = vmax.xlane.f32.xlu1 %v1757_v55  ;;  %v339_v27 = vmax.f32 %v337_v21, %v338_v26  ;;  %v1956_v21 = vld [vmem:[#allocation2 + $0x48] sm:$0xff]  ;;  %2304 = vst [vmem:[#allocation19_spill] sm:$0xff] %v1958_v22 }
  0xff   :  { %v1831_v30 = vmax.f32 %v1822_v28, %v339_v27 }
 0x101   :  { %887 = vst [vmem:[#allocation4] sm:$0x1] %v1831_v30 }
 0x104   :  { %317 = vmax.xlane.f32.xlu0 %v1781_v3  ;;  %309 = vmax.xlane.f32.xlu2 %v1778_v2 }
 0x10c   :  { %983 = vadd.xlane.f32.xlu0 %v959_v33 }
 0x114   :  { %989 = vadd.xlane.f32.xlu0 %v962_v35 }
 0x13f   :  { %v296_v39 = vpop.xlane.xlu2 %295  ;;  %v288_v42 = vpop.xlane.xlu0 %287 }
 0x140   :  { %v1885_v45 = vmax.f32 %v1880_v37, %v296_v39  ;;  %v1888_v46 = vmax.f32 %v1882_v38, %v288_v42  ;;  %v1890_v48 = vpop.xlane.xlu1 %975  ;;  %v1980_v39 = vld [vmem:[#allocation2 + $0x30] sm:$0xff]  ;;  %v1982_v42 = vld [vmem:[#allocation2 + $0x18] sm:$0xff] }
 0x141   :  { %2306 = vst [vmem:[#allocation21_spill] sm:$0xff] %v1980_v39 }
 0x142   :  { %872 = vst.msk [vmem:[#allocation2 + $0x20] sm:$0xff] %vm60_vm5, %v1885_v45  ;;  %433 = vperm.xlu1 %1469, %v1888_v46   ;;  %v596_v18 = vsel %vm60_vm5, %v1885_v45, -inf }
 0x143   :  { %868 = vst.msk [vmem:[#allocation2] sm:$0xff] %vm60_vm5, %v1888_v46 }
 0x144   :  { %2307 = vst [vmem:[#allocation22_spill] sm:$0xff] %v1982_v42 }
 0x147   :  { %v312_v51 = vpop.xlane.xlu0 %311  ;;  %v968_v52 = vpop.xlane.xlu2 %967 }
 0x148   :  { %v1900_v53 = vmax.f32 %v1897_v49, %v312_v51  ;;  %v970_v57 = vpop.xlane.xlu1 %969 }
 0x149   :  { %v1902_v58 = vadd.f32 %v970_v57, %v968_v52 }
 0x14a   :  { %880 = vst.msk [vmem:[#allocation2 + $0x60] sm:$0xff] %vm60_vm5, %v1900_v53  ;;  %453 = vperm.xlu1 %1469, %v1885_v45  }
 0x14f   :  { %v304_v63 = vpop.xlane.xlu2 %303  ;;  %v290_v0 = vpop.xlane.xlu0 %289 }
 0x150   :  { %v1914_v1 = vmax.f32 %v1907_v59, %v304_v63  ;;  %v1917_v4 = vmax.f32 %v1909_v60, %v290_v0  ;;  %v314_v5 = vpop.xlane.xlu1 %313 }
 0x151   :  { %v1920_v6 = vmax.f32 %v1911_v62, %v314_v5 }
 0x152   :  { %876 = vst.msk [vmem:[#allocation2 + $0x40] sm:$0xff] %vm60_vm5, %v1914_v1  ;;  %438 = vperm.xlu2 %1470, %v1917_v4   ;;  %473 = vperm.xlu1 %1469, %v1914_v1  }
 0x153   :  { %869 = vst.msk [vmem:[#allocation2 + $0x8] sm:$0xff] %vm60_vm5, %v1917_v4 }
 0x154   :  { %881 = vst.msk [vmem:[#allocation2 + $0x68] sm:$0xff] %vm60_vm5, %v1920_v6 }
 0x157   :  { %v298_v11 = vpop.xlane.xlu2 %297  ;;  %v1938_v12 = vpop.xlane.xlu0 %977 }
 0x158   :  { %v1941_v14 = vmax.f32 %v1934_v9, %v298_v11  ;;  %v292_v15 = vpop.xlane.xlu1 %291 }
 0x159   :  { %v1944_v16 = vmax.f32 %v1936_v10, %v292_v15 }
 0x15a   :  { %873 = vst.msk [vmem:[#allocation2 + $0x28] sm:$0xff] %vm60_vm5, %v1941_v14  ;;  %458 = vperm.xlu2 %1470, %v1941_v14   ;;  %v598_v11 = vsel %vm60_vm5, %v1941_v14, -inf }
 0x15b   :  { %870 = vst.msk [vmem:[#allocation2 + $0x10] sm:$0xff] %vm60_vm5, %v1944_v16  ;;  %443 = vperm.xlu0 %1471, %v1944_v16  }
 0x15f   :  { %v1960_v25 = vpop.xlane.xlu2 %979  ;;  %v306_v26 = vpop.xlane.xlu0 %305 }
 0x160   :  { %v1963_v27 = vmax.f32 %v1956_v21, %v306_v26  ;;  %v308_v31 = vpop.xlane.xlu1 %307 }
 0x161   :  { %v1966_v33 = vmax.f32 %v1958_v22, %v308_v31  ;;  %v2008_v31 = vld [vmem:[#allocation2 + $0x38] sm:$0xff] }
 0x162   :  { %877 = vst.msk [vmem:[#allocation2 + $0x48] sm:$0xff] %vm60_vm5, %v1963_v27  ;;  %498 = vperm.xlu2 %1470, %v1920_v6  }
 0x163   :  { %878 = vst.msk [vmem:[#allocation2 + $0x50] sm:$0xff] %vm60_vm5, %v1966_v33  ;;  %478 = vperm.xlu0 %1471, %v1963_v27  }
 0x164   :  { %2308 = vst [vmem:[#allocation23_spill] sm:$0xff] %v2008_v31 }
 0x167   :  { %v316_v51 = vpop.xlane.xlu2 %315  ;;  %v300_v52 = vpop.xlane.xlu0 %299 }
 0x168   :  { %v1985_v57 = vmax.f32 %v1978_v36, %v316_v51  ;;  %v1988_v63 = vmax.f32 %v1980_v39, %v300_v52  ;;  %v294_v0 = vpop.xlane.xlu1 %293  ;;  %v608_v39 = vsel %vm60_vm5, %v1966_v33, -inf }
 0x169   :  { %v1991_v5 = vmax.f32 %v1982_v42, %v294_v0  ;;  %v2037_v42 = vld [vmem:[#allocation2 + $0x58] sm:$0xff] }
 0x16a   :  { %882 = vst.msk [vmem:[#allocation2 + $0x70] sm:$0xff] %vm60_vm5, %v1985_v57  ;;  %483 = vperm.xlu2 %1470, %v1966_v33   ;;  %463 = vperm.xlu1 %1469, %v1988_v63   ;;  %v600_v26 = vsel %vm60_vm5, %v1988_v63, -inf }
 0x16b   :  { %874 = vst.msk [vmem:[#allocation2 + $0x30] sm:$0xff] %vm60_vm5, %v1988_v63  ;;  %493 = vperm.xlu0 %1471, %v1900_v53  }
 0x16c   :  { %871 = vst.msk [vmem:[#allocation2 + $0x18] sm:$0xff] %vm60_vm5, %v1991_v5 }
 0x16d   :  { %2310 = vst [vmem:[#allocation25_spill] sm:$0xff] %v2037_v42 }
 0x16f   :  { %v972_v51 = vpop.xlane.xlu0 %971  ;;  %v974_v52 = vpop.xlane.xlu2 %973 }
 0x170   :  { %v1000_v0 = vadd.f32 %v1902_v58, %v972_v51  ;;  %v302_v13 = vpop.xlane.xlu1 %301  ;;  %v592_v58 = vsel %vm60_vm5, %v1888_v46, -inf  ;;  %v593_v51 = vsel %vm60_vm5, %v1917_v4, -inf }
 0x171   :  { %v2012_v35 = vmax.f32 %v2008_v31, %v302_v13  ;;  %v599_v20 = vmax.f32 %v593_v51, %v598_v11  ;;  %v604_v13 = vsel %vm60_vm5, %v1914_v1, -inf  ;;  %v597_v36 = vmax.f32 %v592_v58, %v596_v18 }
 0x172   :  { %v1001_v15 = vadd.f32 %v1000_v0, %v974_v52  ;;  %448 = vperm.xlu2 %1470, %v1991_v5   ;;  %503 = vperm.xlu1 %1469, %v1985_v57   ;;  %v594_v52 = vsel %vm60_vm5, %v1944_v16, -inf  ;;  %v606_v0 = vsel %vm60_vm5, %v1963_v27, -inf }
 0x173   :  { %875 = vst.msk [vmem:[#allocation2 + $0x38] sm:$0xff] %vm60_vm5, %v2012_v35  ;;  %v601_v7 = vmax.f32 %v594_v52, %v600_v26  ;;  %v602_v31 = vsel %vm60_vm5, %v2012_v35, -inf  ;;  %v607_v62 = vmax.f32 %v599_v20, %v606_v0  ;;  %v614_v20 = vsel %vm60_vm5, %v1920_v6, -inf }
 0x174   :  { %v1002_v8 = vadd.f32 %v1001_v15, %v1890_v48  ;;  %v595_v15 = vsel %vm60_vm5, %v1991_v5, -inf }
 0x175   :  { %v603_v18 = vmax.f32 %v595_v15, %v602_v31 }
 0x176   :  { %v1003_v22 = vadd.f32 %v1002_v8, %v1938_v12  ;;  %v605_v8 = vmax.f32 %v597_v36, %v604_v13  ;;  %v609_v12 = vmax.f32 %v601_v7, %v608_v39  ;;  %v615_v7 = vmax.f32 %v607_v62, %v614_v20 }
 0x177   :  { %v318_v48 = vpop.xlane.xlu0 %317  ;;  %v310_v11 = vpop.xlane.xlu2 %309  ;;  %v616_v36 = vsel %vm60_vm5, %v1985_v57, -inf }
 0x178   :  { %v2049_v26 = vmax.f32 %v2035_v34, %v318_v48  ;;  %v2052_v51 = vmax.f32 %v2037_v42, %v310_v11  ;;  %v2055_v52 = vadd.f32 %v1003_v22, %v1960_v25  ;;  %v612_v25 = vsel %vm60_vm5, %v1900_v53, -inf }
 0x179   :  { %v613_v31 = vmax.f32 %v605_v8, %v612_v25  ;;  %v617_v13 = vmax.f32 %v609_v12, %v616_v36 }
 0x17a   :  { %2311 = vst [vmem:[#allocation26_spill] sm:$0xff] %v2055_v52  ;;  %v610_v48 = vsel %vm60_vm5, %v2052_v51, -inf  ;;  %508 = vperm.xlu0 %1471, %v2049_v26   ;;  %468 = vperm.xlu2 %1470, %v2012_v35   ;;  %v618_v39 = vsel %vm60_vm5, %v2049_v26, -inf }
 0x17b   :  { %883 = vst.msk [vmem:[#allocation2 + $0x78] sm:$0xff] %vm60_vm5, %v2049_v26  ;;  %v611_v22 = vmax.f32 %v603_v18, %v610_v48  ;;  %488 = vperm.xlu1 %1469, %v2052_v51   ;;  %v620_v15 = vmax.f32 %v613_v31, %v615_v7 }
 0x17c   :  { %879 = vst.msk [vmem:[#allocation2 + $0x58] sm:$0xff] %vm60_vm5, %v2052_v51 }
 0x17d   :  { %v619_v11 = vmax.f32 %v611_v22, %v618_v39 }
 0x17f   :  { %v621_v62 = vmax.f32 %v617_v13, %v619_v11 }
 0x181   :  { %v622_v18 = vmax.f32 %v620_v15, %v621_v62 }
 0x183   :  { %v623_v20 = vrot.slane %v622_v18, 4 }
 0x185   :  { %v624_v48 = vmax.f32 %v622_v18, %v623_v20 }
 0x187   :  { %v625_v0 = vrot.slane %v624_v48, 2 }
 0x189   :  { %v626_v58 = vmax.f32 %v624_v48, %v625_v0 }
 0x18b   :  { %v627_v42 = vrot.slane %v626_v58, 1 }
 0x18d   :  { %v2078_v52 = vmax.f32 %v626_v58, %v627_v42 }
 0x18f   :  { %679 = vperm.xlu1 %1469, %v2078_v52   ;;  %v631_v34 = vsub.f32 %v1944_v16, %v2078_v52  ;;  %v630_v8 = vsub.f32 %v1917_v4, %v2078_v52  ;;  %v629_v12 = vsub.f32 %v1888_v46, %v2078_v52  ;;  %v634_v0 = vsub.f32 %v1941_v14, %v2078_v52 }
 0x190   :  { %v632_v42 = vsub.f32 %v1991_v5, %v2078_v52  ;;  %v633_v58 = vsub.f32 %v1885_v45, %v2078_v52  ;;  %v637_v15 = vsub.f32 %v1914_v1, %v2078_v52  ;;  %v635_v62 = vsub.f32 %v1988_v63, %v2078_v52 }
 0x191   :  { %v649_v7 = vmul.f32 1.442695, %v631_v34  ;;  %v647_v22 = vmul.f32 1.442695, %v630_v8  ;;  %v645_v25 = vmul.f32 1.442695, %v629_v12  ;;  %v636_v18 = vsub.f32 %v2012_v35, %v2078_v52 }
 0x192   :  { %v655_v36 = vmul.f32 1.442695, %v634_v0  ;;  %v651_v39 = vmul.f32 1.442695, %v632_v42  ;;  %v653_v13 = vmul.f32 1.442695, %v633_v58  ;;  %v638_v0 = vsub.f32 %v1963_v27, %v2078_v52 }
 0x193   :  { %1472 = vpow2.f32 %v649_v7  ;;  %v661_v20 = vmul.f32 1.442695, %v637_v15  ;;  %v657_v48 = vmul.f32 1.442695, %v635_v62  ;;  %v659_v12 = vmul.f32 1.442695, %v636_v18 }
 0x194   :  { %1474 = vpow2.f32 %v647_v22  ;;  %v639_v42 = vsub.f32 %v1966_v33, %v2078_v52  ;;  %v641_v15 = vsub.f32 %v1900_v53, %v2078_v52  ;;  %v642_v62 = vsub.f32 %v1920_v6, %v2078_v52 }
 0x195   :  { %1476 = vpow2.f32 %v645_v25  ;;  %v640_v25 = vsub.f32 %v2052_v51, %v2078_v52 }
 0x196   :  { %1478 = vpow2.f32 %v655_v36  ;;  %v663_v36 = vmul.f32 1.442695, %v638_v0 }
 0x197   :  { %1480 = vpow2.f32 %v651_v39  ;;  %v667_v58 = vmul.f32 1.442695, %v640_v25 }
 0x198   :  { %1482 = vpow2.f32 %v653_v13 }
 0x199   :  { %v1473_v31 = vpop.eup %1472  ;;  %1484 = vpow2.f32 %v661_v20  ;;  %v669_v20 = vmul.f32 1.442695, %v641_v15 }
 0x19a   :  { %v1475_v11 = vpop.eup %1474  ;;  %698 = vperm.xlu1 %1469, %v1473_v31   ;;  %1486 = vpow2.f32 %v657_v48  ;;  %v665_v31 = vmul.f32 1.442695, %v639_v42 }
 0x19b   :  { %v1477_v34 = vpop.eup %1476  ;;  %693 = vperm.xlu0 %1471, %v1475_v11   ;;  %1488 = vpow2.f32 %v659_v12 }
 0x19c   :  { %688 = vperm.xlu2 %1470, %v1477_v34   ;;  %v1479_v8 = vpop.eup %1478  ;;  %1490 = vpow2.f32 %v667_v58  ;;  %v643_v34 = vsub.f32 %v1985_v57, %v2078_v52  ;;  %v2113_v58 = vpop.xlane.xlu0 %983 }
 0x19d   :  { %v1481_v7 = vpop.eup %1480  ;;  %1492 = vpow2.f32 %v663_v36  ;;  %2312 = vst [vmem:[#allocation27_spill] sm:$0xff] %v2113_v58 }
 0x19e   :  { %v1483_v22 = vpop.eup %1482  ;;  %1494 = vpow2.f32 %v665_v31  ;;  %v673_v18 = vmul.f32 1.442695, %v643_v34 }
 0x19f   :  { %v1485_v39 = vpop.eup %1484 }
 0x1a0   :  { %v1487_v13 = vpop.eup %1486  ;;  %1496 = vpow2.f32 %v673_v18 }
 0x1a1   :  { %v1489_v11 = vpop.eup %1488  ;;  %1498 = vpow2.f32 %v669_v20  ;;  %v905_v20 = vadd.s32 56, %v1692_v17 }
 0x1a2   :  { %713 = vperm.xlu1 %1469, %v1479_v8   ;;  %v1491_v48 = vpop.eup %1490  ;;  %v671_v8 = vmul.f32 1.442695, %v642_v62 }
 0x1a3   :  { %703 = vperm.xlu0 %1471, %v1481_v7   ;;  %v1493_v12 = vpop.eup %1492  ;;  %vm942_vm10 = vcmp.eq.s32.totalorder %v905_v20, %v1695_v19 }
 0x1a4   :  { %708 = vperm.xlu2 %1470, %v1483_v22   ;;  %v1495_v7 = vpop.eup %1494  ;;  %v644_v22 = vsub.f32 %v2049_v26, %v2078_v52  ;;  %1500 = vpow2.f32 %v671_v8  ;;  %v2115_v31 = vpop.xlane.xlu0 %989 }
 0x1a5   :  { %2313 = vst [vmem:[#allocation28_spill] sm:$0xff] %v2115_v31 }
 0x1a6   :  { %v675_v25 = vmul.f32 1.442695, %v644_v22  ;;  %v1497_v0 = vpop.eup %1496 }
 0x1a7   :  { %v1499_v42 = vpop.eup %1498 }
 0x1a8   :  { %1502 = vpow2.f32 %v675_v25  ;;  %v958_v25 = vsel %vm942_vm10, %v1757_v55, 0.0 }
 0x1aa   :  { %728 = vperm.xlu1 %1469, %v1485_v39   ;;  %v1501_v36 = vpop.eup %1500 }
 0x1ab   :  { %718 = vperm.xlu0 %1471, %v1487_v13  }
 0x1ac   :  { %723 = vperm.xlu2 %1470, %v1489_v11   ;;  %v439_v13 = vpop.permute.xlu2 %438 }
 0x1ae   :  { %v1503_v39 = vpop.eup %1502 }
 0x1b2   :  { %743 = vperm.xlu1 %1469, %v1491_v48   ;;  %v907_v48 = vadd.s32 72, %v1692_v17 }
 0x1b3   :  { %733 = vperm.xlu0 %1471, %v1493_v12  }
 0x1b4   :  { %738 = vperm.xlu2 %1470, %v1495_v7   ;;  %v434_v11 = vpop.permute.xlu1 %433  ;;  %v459_v52 = vpop.permute.xlu2 %458  ;;  %vm944_vm11 = vcmp.eq.s32.totalorder %v907_v48, %v1695_v19 }
 0x1ba   :  { %758 = vperm.xlu1 %1469, %v1497_v0   ;;  %v960_v0 = vsel %vm944_vm11, %v1747_v50, 0.0 }
 0x1bb   :  { %748 = vperm.xlu0 %1471, %v1499_v42   ;;  %v908_v42 = vadd.s32 80, %v1692_v17 }
 0x1bc   :  { %753 = vperm.xlu2 %1470, %v1501_v36   ;;  %v454_v62 = vpop.permute.xlu1 %453  ;;  %v2120_v12 = vpop.permute.xlu2 %498  ;;  %v511_v36 = vsub.f32 %v1704_v23, %v434_v11 }
 0x1bd   :  { %vm945_vm12 = vcmp.eq.s32.totalorder %v908_v42, %v1695_v19  ;;  %v515_v23 = vsub.f32 %v1707_v24, %v454_v62 }
 0x1be   :  { %v527_v20 = vmul.f32 1.442695, %v511_v36 }
 0x1c3   :  { %763 = vperm.xlu0 %1471, %v1503_v39   ;;  %v910_v39 = vadd.s32 96, %v1692_v17 }
 0x1c4   :  { %v474_v7 = vpop.permute.xlu1 %473  ;;  %v2131_v48 = vpop.permute.xlu2 %483 }
 0x1c5   :  { %vm947_vm13 = vcmp.eq.s32.totalorder %v910_v39, %v1695_v19 }
 0x1c6   :  { %v963_v11 = vsel %vm947_vm13, %v1716_v29, 0.0 }
 0x1cd   :  { %v444_v34 = vpop.permute.xlu0 %443 }
 0x1d5   :  { %v479_v15 = vpop.permute.xlu0 %478 }
 0x1dc   :  { %v464_v31 = vpop.permute.xlu1 %463 }
 0x1dd   :  { %v494_v18 = vpop.permute.xlu0 %493 }
 0x1de   :  { %v523_v8 = vsub.f32 %v1716_v29, %v494_v18  ;;  %v520_v18 = vsub.f32 %v1747_v50, %v479_v15  ;;  %v911_v50 = vadd.s32 104, %v1692_v17  ;;  %v519_v15 = vsub.f32 %v1727_v40, %v474_v7  ;;  %v449_v29 = vpop.permute.xlu2 %448 }
 0x1df   :  { %v512_v40 = vsub.f32 %v1720_v32, %v439_v13 }
 0x1e0   :  { %v551_v22 = vmul.f32 1.442695, %v523_v8  ;;  %v545_v8 = vmul.f32 1.442695, %v520_v18  ;;  %vm948_vm14 = vcmp.eq.s32.totalorder %v911_v50, %v1695_v19  ;;  %v543_v42 = vmul.f32 1.442695, %v519_v15 }
 0x1e1   :  { %v964_v39 = vsel %vm948_vm14, %v1730_v41, 0.0  ;;  %v529_v7 = vmul.f32 1.442695, %v512_v40 }
 0x1e2   :  { %1504 = vpow2.f32 %v551_v22  ;;  %v513_v22 = vsub.f32 %v1744_v47, %v444_v34  ;;  %v516_v47 = vsub.f32 %v1737_v43, %v459_v52  ;;  %v517_v34 = vsub.f32 %v1740_v44, %v464_v31 }
 0x1e3   :  { %1506 = vpow2.f32 %v527_v20  ;;  %v524_v43 = vsub.f32 %v1730_v41, %v2120_v12  ;;  %v521_v12 = vsub.f32 %v1754_v54, %v2131_v48  ;;  %v912_v48 = vadd.s32 112, %v1692_v17 }
 0x1e4   :  { %981 = vadd.xlane.f32.xlu1 %v958_v25  ;;  %v961_v25 = vsel %vm945_vm12, %v1754_v54, 0.0  ;;  %1508 = vpow2.f32 %v545_v8  ;;  %v531_v36 = vmul.f32 1.442695, %v513_v22  ;;  %v504_v24 = vpop.permute.xlu1 %503  ;;  %v537_v20 = vmul.f32 1.442695, %v516_v47 }
 0x1e5   :  { %985 = vadd.xlane.f32.xlu2 %v960_v0  ;;  %v535_v0 = vmul.f32 1.442695, %v515_v23  ;;  %v525_v44 = vsub.f32 %v1772_v61, %v504_v24  ;;  %v553_v50 = vmul.f32 1.442695, %v524_v43  ;;  %v547_v40 = vmul.f32 1.442695, %v521_v12 }
 0x1e6   :  { %vm949_vm15 = vcmp.eq.s32.totalorder %v912_v48, %v1695_v19 }
 0x1e7   :  { %1510 = vpow2.f32 %v535_v0  ;;  %v555_v15 = vmul.f32 1.442695, %v525_v44 }
 0x1e8   :  { %v2135_v58 = vpop.eup %1504  ;;  %1512 = vpow2.f32 %v543_v42 }
 0x1e9   :  { %v2144_v62 = vpop.eup %1506  ;;  %1514 = vpow2.f32 %v531_v36 }
 0x1ea   :  { %v2147_v18 = vpop.eup %1508  ;;  %1516 = vpow2.f32 %v529_v7 }
 0x1eb   :  { %1518 = vpow2.f32 %v537_v20 }
 0x1ec   :  { %987 = vadd.xlane.f32.xlu1 %v961_v25  ;;  %v539_v25 = vmul.f32 1.442695, %v517_v34  ;;  %v509_v32 = vpop.permute.xlu0 %508 }
 0x1ed   :  { %991 = vadd.xlane.f32.xlu2 %v963_v11  ;;  %583 = vadd.xlane.f32.xlu0 %v2135_v58  ;;  %v2154_v8 = vpop.eup %1510  ;;  %v489_v52 = vpop.permute.xlu1 %488  ;;  %v526_v31 = vsub.f32 %v1781_v3, %v509_v32 }
 0x1ee   :  { %v2156_v23 = vpop.eup %1512  ;;  %v469_v11 = vpop.permute.xlu2 %468  ;;  %1520 = vpow2.f32 %v539_v25 }
 0x1ef   :  { %v1515_v13 = vpop.eup %1514  ;;  %v557_v0 = vmul.f32 1.442695, %v526_v31  ;;  %1522 = vpow2.f32 %v553_v50  ;;  %v518_v54 = vsub.f32 %v1757_v55, %v469_v11 }
 0x1f0   :  { %v1517_v22 = vpop.eup %1516  ;;  %1524 = vpow2.f32 %v555_v15 }
 0x1f1   :  { %v1519_v42 = vpop.eup %1518  ;;  %1526 = vpow2.f32 %v557_v0  ;;  %v541_v31 = vmul.f32 1.442695, %v518_v54 }
 0x1f2   :  { %1528 = vpow2.f32 %v547_v40 }
 0x1f4   :  { %993 = vadd.xlane.f32.xlu1 %v964_v39  ;;  %v1521_v36 = vpop.eup %1520  ;;  %v514_v39 = vsub.f32 %v1760_v56, %v449_v29  ;;  %v522_v29 = vsub.f32 %v1778_v2, %v489_v52 }
 0x1f5   :  { %559 = vadd.xlane.f32.xlu2 %v2144_v62  ;;  %577 = vadd.xlane.f32.xlu0 %v2147_v18  ;;  %v2169_v47 = vpop.eup %1522 }
 0x1f6   :  { %v689_v24 = vpop.permute.xlu2 %688  ;;  %v533_v34 = vmul.f32 1.442695, %v514_v39  ;;  %v2171_v7 = vpop.eup %1524  ;;  %v549_v50 = vmul.f32 1.442695, %v522_v29  ;;  %v965_v39 = vsel %vm949_vm15, %v1772_v61, 0.0  ;;  %v913_v61 = vadd.s32 120, %v1692_v17 }
 0x1f7   :  { %v2173_v20 = vpop.eup %1526  ;;  %v766_v44 = vmul.f32 %v2144_v62, %v689_v24 }
 0x1f8   :  { %1530 = vpow2.f32 %v533_v34  ;;  %v1529_v55 = vpop.eup %1528  ;;  %vm950_vm0 = vcmp.eq.s32.totalorder %v913_v61, %v1695_v19 }
 0x1f9   :  { %1532 = vpow2.f32 %v541_v31 }
 0x1fa   :  { %1534 = vpow2.f32 %v549_v50 }
 0x1fc   :  { %567 = vadd.xlane.f32.xlu1 %v2154_v8 }
 0x1fd   :  { %575 = vadd.xlane.f32.xlu2 %v2156_v23  ;;  %563 = vadd.xlane.f32.xlu0 %v1515_v13 }
 0x1fe   :  { %v709_v43 = vpop.permute.xlu2 %708  ;;  %v1531_v11 = vpop.eup %1530 }
 0x1ff   :  { %v770_v62 = vmul.f32 %v2154_v8, %v709_v43  ;;  %v1533_v54 = vpop.eup %1532 }
 0x201   :  { %v2164_v41 = vpop.permute.xlu1 %679 }
 0x204   :  { %561 = vadd.xlane.f32.xlu1 %v1517_v22 }
 0x205   :  { %569 = vadd.xlane.f32.xlu2 %v1519_v42  ;;  %571 = vadd.xlane.f32.xlu0 %v1521_v36 }
 0x206   :  { %v724_v40 = vpop.permute.xlu2 %723 }
 0x20c   :  { %585 = vadd.xlane.f32.xlu1 %v2169_v47  ;;  %v699_v25 = vpop.permute.xlu1 %698 }
 0x20d   :  { %587 = vadd.xlane.f32.xlu2 %v2171_v7  ;;  %589 = vadd.xlane.f32.xlu0 %v2173_v20  ;;  %v694_v56 = vpop.permute.xlu0 %693  ;;  %v768_v0 = vmul.f32 %v1515_v13, %v699_v25 }
 0x20e   :  { %v767_v32 = vmul.f32 %v1517_v22, %v694_v56  ;;  %v1535_v56 = vpop.eup %1534  ;;  %v739_v8 = vpop.permute.xlu2 %738 }
 0x210   :  { %v782_v15 = vadd.f32 %v767_v32, %v766_v44  ;;  %v773_v44 = vmul.f32 %v1533_v54, %v724_v40 }
 0x212   :  { %v783_v22 = vadd.f32 %v782_v15, %v768_v0  ;;  %v966_v15 = vsel %vm950_vm0, %v1781_v3, 0.0 }
 0x214   :  { %579 = vadd.xlane.f32.xlu1 %v1529_v55  ;;  %v714_v12 = vpop.permute.xlu1 %713 }
 0x215   :  { %565 = vadd.xlane.f32.xlu2 %v1531_v11  ;;  %995 = vadd.xlane.f32.xlu0 %v965_v39  ;;  %v704_v2 = vpop.permute.xlu0 %703  ;;  %v771_v48 = vmul.f32 %v1519_v42, %v714_v12  ;;  %v776_v39 = vmul.f32 %v1529_v55, %v739_v8  ;;  %v428_v55 = vsub.f32 %v1822_v28, %v1831_v30 }
 0x216   :  { %v769_v52 = vmul.f32 %v1531_v11, %v704_v2 }
 0x217   :  { %v429_v61 = vmul.f32 1.442695, %v428_v55 }
 0x218   :  { %v784_v24 = vadd.f32 %v783_v22, %v769_v52  ;;  %v754_v52 = vpop.permute.xlu2 %753 }
 0x219   :  { %v779_v40 = vmul.f32 %v2169_v47, %v754_v52  ;;  %1536 = vpow2.f32 %v429_v61 }
 0x21a   :  { %v785_v34 = vadd.f32 %v784_v24, %v770_v62 }
 0x21c   :  { %573 = vadd.xlane.f32.xlu1 %v1533_v54  ;;  %v729_v13 = vpop.permute.xlu1 %728  ;;  %v786_v32 = vadd.f32 %v785_v34, %v771_v48  ;;  %v682_v54 = vsub.f32 %v2164_v41, %v1831_v30 }
 0x21d   :  { %581 = vadd.xlane.f32.xlu2 %v1535_v56  ;;  %v719_v25 = vpop.permute.xlu0 %718  ;;  %v774_v43 = vmul.f32 %v2156_v23, %v729_v13 }
 0x21e   :  { %v772_v29 = vmul.f32 %v1521_v36, %v719_v25  ;;  %v683_v25 = vmin.f32 %v682_v54, 80.0  ;;  %v816_v54 = vld [vmem:[#allocation3 + $0x60] sm:$0xff] }
 0x21f   :  { %v1537_v8 = vpop.eup %1536 }
 0x220   :  { %v787_v31 = vadd.f32 %v786_v32, %v772_v29  ;;  %v684_v47 = vmul.f32 1.442695, %v683_v25  ;;  %v2316_v25 = vsub.f32 %v1936_v10, %v1944_v16  ;;  %v2317_v10 = vsub.f32 %v1909_v60, %v1917_v4  ;;  %v808_v60 = vld [vmem:[#allocation3 + $0x20] sm:$0xff] }
 0x222   :  { %v788_v50 = vadd.f32 %v787_v31, %v773_v44  ;;  %v1314_v44 = vld [vmem:[#allocation4] sm:$0x1]  ;;  %1538 = vpow2.f32 %v684_v47  ;;  %v398_v16 = vmul.f32 1.442695, %v2317_v10 }
 0x223   :  { %v1315_v41 = vsub.f32 0.0, %v1314_v44  ;;  %v804_v47 = vld [vmem:[#allocation3] sm:$0xff] }
 0x224   :  { %v789_v0 = vadd.f32 %v788_v50, %v774_v43  ;;  %v744_v12 = vpop.permute.xlu1 %743  ;;  %v378_v43 = vld [vmem:[#allocation5] sm:$0x1] }
 0x225   :  { %997 = vadd.xlane.f32.xlu2 %v966_v15  ;;  %v734_v42 = vpop.permute.xlu0 %733  ;;  %v777_v2 = vmul.f32 %v1535_v56, %v744_v12  ;;  %v1316_v28 = vmul.f32 1.442695, %v1315_v41  ;;  %v392_v12 = vsub.f32 %v1897_v49, %v1900_v53 }
 0x226   :  { %v775_v11 = vmul.f32 %v2147_v18, %v734_v42  ;;  %v884_v42 = vmul.f32 %v1537_v8, %v378_v43 }
 0x227   :  { %1540 = vpow2.f32 %v1316_v28 }
 0x228   :  { %v790_v17 = vadd.f32 %v789_v0, %v775_v11  ;;  %v1539_v15 = vpop.eup %1538 }
 0x22a   :  { %v791_v36 = vadd.f32 %v790_v17, %v776_v39  ;;  %v420_v17 = vmul.f32 1.442695, %v392_v12  ;;  %v2321_v12 = vld [vmem:[#allocation18_spill] sm:$0xff] }
 0x22c   :  { %v792_v24 = vadd.f32 %v791_v36, %v777_v2  ;;  %v759_v34 = vpop.permute.xlu1 %758  ;;  %1542 = vpow2.f32 %v420_v17 }
 0x22d   :  { %v749_v22 = vpop.permute.xlu0 %748  ;;  %v780_v18 = vmul.f32 %v2171_v7, %v759_v34  ;;  %v1541_v0 = vpop.eup %1540 }
 0x22e   :  { %v778_v62 = vmul.f32 %v2135_v58, %v749_v22  ;;  %v1318_v39 = vmul.f32 120.0, %v1541_v0  ;;  %v380_v22 = vsub.f32 %v1882_v38, %v1888_v46 }
 0x230   :  { %v793_v23 = vadd.f32 %v792_v24, %v778_v62 }
 0x232   :  { %v794_v3 = vadd.f32 %v793_v23, %v779_v40  ;;  %v396_v40 = vmul.f32 1.442695, %v380_v22  ;;  %v2314_v23 = vsub.f32 %v1956_v21, %v1963_v27  ;;  %v1543_v49 = vpop.eup %1542  ;;  %v2315_v27 = vsub.f32 %v1907_v59, %v1914_v1 }
 0x233   :  { %v832_v46 = vmul.f32 %v1543_v49, %v816_v54  ;;  %v2322_v49 = vld [vmem:[#allocation20_spill] sm:$0xff] }
 0x234   :  { %v795_v13 = vadd.f32 %v794_v3, %v780_v18  ;;  %v414_v34 = vmul.f32 1.442695, %v2314_v23  ;;  %v384_v3 = vsub.f32 %v1880_v37, %v1885_v45 }
 0x235   :  { %v764_v48 = vpop.permute.xlu0 %763 }
 0x236   :  { %v781_v56 = vmul.f32 %v2173_v20, %v764_v48  ;;  %v404_v48 = vmul.f32 1.442695, %v384_v3 }
 0x238   :  { %v796_v58 = vadd.f32 %v795_v13, %v781_v56  ;;  %v412_v13 = vmul.f32 1.442695, %v2315_v27  ;;  %v805_v27 = vld [vmem:[#allocation3 + $0x8] sm:$0xff] }
 0x23a   :  { %v797_v29 = vrot.slane %v796_v58, 4 }
 0x23c   :  { %v798_v32 = vadd.f32 %v797_v29, %v796_v58  ;;  %v400_v58 = vmul.f32 1.442695, %v2316_v25 }
 0x23e   :  { %v799_v31 = vrot.slane %v798_v32, 2 }
 0x240   :  { %v800_v50 = vadd.f32 %v799_v31, %v798_v32  ;;  %v813_v32 = vld [vmem:[#allocation3 + $0x48] sm:$0xff]  ;;  %v2225_v31 = vld [vmem:[#allocation2] sm:$0xff] }
 0x241   :  { %v1060_v0 = vsub.f32 0.0, %v2225_v31 }
 0x242   :  { %v801_v7 = vrot.slane %v800_v50, 1 }
 0x244   :  { %v802_v30 = vadd.f32 %v801_v7, %v800_v50  ;;  %v2318_v7 = vsub.f32 %v1934_v9, %v1941_v14  ;;  %v812_v9 = vld [vmem:[#allocation3 + $0x40] sm:$0xff]  ;;  %v806_v14 = vld [vmem:[#allocation3 + $0x10] sm:$0xff] }
 0x246   :  { %v803_v20 = vmul.f32 %v1539_v15, %v802_v30  ;;  %v406_v8 = vmul.f32 1.442695, %v2318_v7  ;;  %v2319_v15 = vld [vmem:[#allocation21_spill] sm:$0xff] }
 0x248   :  { %v885_v11 = vadd.f32 %v884_v42, %v803_v20  ;;  %v2320_v20 = vsub.f32 %v2319_v15, %v1988_v63  ;;  %v1076_v63 = vmul.f32 1.442695, %v1060_v0  ;;  %v818_v15 = vld [vmem:[#allocation3 + $0x70] sm:$0xff] }
 0x24a   :  { %886 = vst [vmem:[#allocation5] sm:$0x1] %v885_v11  ;;  %v408_v42 = vmul.f32 1.442695, %v2320_v20  ;;  %v819_v20 = vld [vmem:[#allocation3 + $0x78] sm:$0xff] }
 0x251   :  { %v1313_v36 = vld [vmem:[#allocation5] sm:$0x1] }
 0x252   :  { %v1319_v2 = vsub.f32 %v1313_v36, %v1318_v39  ;;  %v393_v39 = vsub.f32 %v2321_v12, %v1920_v6 }
 0x254   :  { %v1320_v52 = vmax.f32 %v1319_v2, 1e-30  ;;  %v422_v22 = vmul.f32 1.442695, %v393_v39 }
 0x256   :  { %1544 = vlog2.f32 %v1320_v52 }
 0x257   :  { %v2202_v62 = vpop.xlane.xlu1 %981  ;;  %1546 = vpow2.f32 %v396_v40 }
 0x258   :  { %v2204_v24 = vpop.xlane.xlu2 %985  ;;  %1548 = vpow2.f32 %v414_v34 }
 0x259   :  { %1550 = vpow2.f32 %v404_v48 }
 0x25a   :  { %1552 = vpow2.f32 %v412_v13 }
 0x25b   :  { %1554 = vpow2.f32 %v400_v58 }
 0x25c   :  { %v1545_v53 = vpop.eup %1544  ;;  %1556 = vpow2.f32 %v398_v16 }
 0x25d   :  { %v1322_v18 = vmul.f32 0.6931472, %v1545_v53  ;;  %v1547_v61 = vpop.eup %1546  ;;  %1558 = vpow2.f32 %v406_v8  ;;  %v2323_v53 = vsub.f32 %v2322_v49, %v1985_v57  ;;  %v809_v57 = vld [vmem:[#allocation3 + $0x28] sm:$0xff] }
 0x25e   :  { %v1549_v29 = vpop.eup %1548  ;;  %1560 = vpow2.f32 %v408_v42 }
 0x25f   :  { %v2212_v38 = vpop.xlane.xlu1 %987  ;;  %v1323_v55 = vadd.f32 %v1322_v18, %v1314_v44  ;;  %v820_v44 = vmul.f32 %v1547_v61, %v804_v47  ;;  %v829_v1 = vmul.f32 %v1549_v29, %v813_v32  ;;  %v1551_v30 = vpop.eup %1550  ;;  %v424_v3 = vmul.f32 1.442695, %v2323_v53  ;;  %v2326_v32 = vld [vmem:[#allocation19_spill] sm:$0xff] }
 0x260   :  { %v2214_v56 = vpop.xlane.xlu2 %991  ;;  %v584_v21 = vpop.xlane.xlu0 %583  ;;  %v824_v17 = vmul.f32 %v1551_v30, %v808_v60  ;;  %1562 = vpow2.f32 %v1076_v63  ;;  %v2332_v63 = vld [vmem:[#allocation26_spill] sm:$0xff] }
 0x261   :  { %v848_v37 = vadd.f32 %v832_v46, %v584_v21  ;;  %v1327_v45 = vsel %vm1326_vm1, %v1323_v55, 0.0  ;;  %v1553_v11 = vpop.eup %1552  ;;  %v2324_v46 = vld [vmem:[#allocation24_spill] sm:$0xff]  ;;  %1564 = vpow2.f32 %v422_v22 }
 0x262   :  { %v1330_v19 = vsel %vm1329_vm2, %v1327_v45, 0.0  ;;  %v1555_v4 = vpop.eup %1554  ;;  %v828_v36 = vmul.f32 %v1553_v11, %v812_v9  ;;  %v2325_v55 = vsub.f32 %v2324_v46, %v2049_v26  ;;  %1566 = vpow2.f32 %v424_v3  ;;  %v807_v3 = vld [vmem:[#allocation3 + $0x18] sm:$0xff] }
 0x263   :  { %864 = vst.msk [vmem:[#allocation3 + $0x60] sm:$0xff] %vm60_vm5, %v848_v37  ;;  %1331 = vadd.xlane.f32.xlu1 %v1330_v19  ;;  %v822_v52 = vmul.f32 %v1555_v4, %v806_v14  ;;  %v1557_v18 = vpop.eup %1556  ;;  %v810_v37 = vld [vmem:[#allocation3 + $0x30] sm:$0xff] }
 0x264   :  { %v426_v48 = vmul.f32 1.442695, %v2325_v55  ;;  %v1559_v21 = vpop.eup %1558  ;;  %v821_v45 = vmul.f32 %v1557_v18, %v805_v27  ;;  %v2330_v4 = vld [vmem:[#allocation23_spill] sm:$0xff] }
 0x265   :  { %v1561_v13 = vpop.eup %1560  ;;  %v825_v25 = vmul.f32 %v1559_v21, %v809_v57  ;;  %v2331_v12 = vsub.f32 %v2330_v4, %v2012_v35  ;;  %v814_v35 = vld [vmem:[#allocation3 + $0x50] sm:$0xff]  ;;  %v2336_v21 = vmov 0.0  }
 0x266   :  { %1568 = vpow2.f32 %v426_v48  ;;  %v826_v26 = vmul.f32 %v1561_v13, %v810_v37  ;;  %v1563_v47 = vpop.eup %1562  ;;  %56 = vst.msk [vmem:[#allocation6] sm:$0x1] %vm55_vm3, %v2336_v21 }
 0x267   :  { %v2223_v59 = vpop.xlane.xlu1 %993  ;;  %v1108_v11 = vmul.f32 120.0, %v1563_v47  ;;  %v410_v39 = vmul.f32 1.442695, %v2331_v12 }
 0x268   :  { %v560_v41 = vpop.xlane.xlu2 %559  ;;  %v578_v50 = vpop.xlane.xlu0 %577 }
 0x269   :  { %v836_v43 = vadd.f32 %v820_v44, %v560_v41  ;;  %v845_v28 = vadd.f32 %v829_v1, %v578_v50  ;;  %v2327_v44 = vsub.f32 %v2326_v32, %v1966_v33  ;;  %v1565_v41 = vpop.eup %1564  ;;  %v2328_v50 = vld [vmem:[#allocation22_spill] sm:$0xff] }
 0x26a   :  { %v2329_v7 = vsub.f32 %v2328_v50, %v1991_v5 }
 0x26b   :  { %852 = vst.msk [vmem:[#allocation3] sm:$0xff] %vm60_vm5, %v836_v43  ;;  %v416_v1 = vmul.f32 1.442695, %v2327_v44  ;;  %v1567_v43 = vpop.eup %1566 }
 0x26c   :  { %861 = vst.msk [vmem:[#allocation3 + $0x48] sm:$0xff] %vm60_vm5, %v845_v28  ;;  %v402_v8 = vmul.f32 1.442695, %v2329_v7  ;;  %v817_v28 = vld [vmem:[#allocation3 + $0x68] sm:$0xff]  ;;  %v1569_v30 = vpop.eup %1568  ;;  %v834_v0 = vmul.f32 %v1567_v43, %v818_v15 }
 0x26d   :  { %1570 = vpow2.f32 %v416_v1  ;;  %v833_v42 = vmul.f32 %v1565_v41, %v817_v28  ;;  %v835_v5 = vmul.f32 %v1569_v30, %v819_v20 }
 0x26e   :  { %1572 = vpow2.f32 %v402_v8 }
 0x26f   :  { %v568_v2 = vpop.xlane.xlu1 %567  ;;  %1574 = vpow2.f32 %v410_v39 }
 0x270   :  { %v576_v40 = vpop.xlane.xlu2 %575  ;;  %v840_v23 = vadd.f32 %v824_v17, %v568_v2  ;;  %v564_v34 = vpop.xlane.xlu0 %563 }
 0x271   :  { %v844_v6 = vadd.f32 %v828_v36, %v576_v40  ;;  %v838_v54 = vadd.f32 %v822_v52, %v564_v34  ;;  %v1005_v36 = vadd.f32 %v2332_v63, %v2202_v62  ;;  %v2333_v40 = vld [vmem:[#allocation25_spill] sm:$0xff] }
 0x272   :  { %856 = vst.msk [vmem:[#allocation3 + $0x20] sm:$0xff] %vm60_vm5, %v840_v23  ;;  %v1028_v33 = vld [vmem:[#allocation3] sm:$0xff]  ;;  %v2334_v23 = vsub.f32 %v2333_v40, %v2052_v51 }
 0x273   :  { %860 = vst.msk [vmem:[#allocation3 + $0x40] sm:$0xff] %vm60_vm5, %v844_v6  ;;  %v1124_v2 = vsub.f32 %v1028_v33, %v1108_v11  ;;  %v1571_v49 = vpop.eup %1570  ;;  %v2335_v6 = vld [vmem:[#allocation27_spill] sm:$0xff] }
 0x274   :  { %854 = vst.msk [vmem:[#allocation3 + $0x10] sm:$0xff] %vm60_vm5, %v838_v54  ;;  %v418_v34 = vmul.f32 1.442695, %v2334_v23  ;;  %v1573_v53 = vpop.eup %1572  ;;  %v1006_v62 = vadd.f32 %v1005_v36, %v2335_v6  ;;  %v830_v18 = vmul.f32 %v1571_v49, %v814_v35 }
 0x275   :  { %v1140_v54 = vmax.f32 %v1124_v2, 1e-30  ;;  %v823_v46 = vmul.f32 %v1573_v53, %v807_v3  ;;  %v1575_v57 = vpop.eup %1574 }
 0x276   :  { %1576 = vpow2.f32 %v418_v34  ;;  %v1007_v27 = vadd.f32 %v1006_v62, %v2204_v24 }
 0x277   :  { %v562_v58 = vpop.xlane.xlu1 %561  ;;  %1578 = vlog2.f32 %v1140_v54 }
 0x278   :  { %v570_v19 = vpop.xlane.xlu2 %569  ;;  %v837_v61 = vadd.f32 %v821_v45, %v562_v58  ;;  %v572_v29 = vpop.xlane.xlu0 %571  ;;  %v1008_v37 = vadd.f32 %v1007_v27, %v2212_v38  ;;  %v811_v45 = vld [vmem:[#allocation3 + $0x38] sm:$0xff] }
 0x279   :  { %v841_v10 = vadd.f32 %v825_v25, %v570_v19  ;;  %v842_v16 = vadd.f32 %v826_v26, %v572_v29  ;;  %v815_v58 = vld [vmem:[#allocation3 + $0x58] sm:$0xff]  ;;  %v827_v26 = vmul.f32 %v1575_v57, %v811_v45 }
 0x27a   :  { %853 = vst.msk [vmem:[#allocation3 + $0x8] sm:$0xff] %vm60_vm5, %v837_v61  ;;  %v2337_v61 = vld [vmem:[#allocation28_spill] sm:$0xff] }
 0x27b   :  { %857 = vst.msk [vmem:[#allocation3 + $0x28] sm:$0xff] %vm60_vm5, %v841_v10  ;;  %v1009_v29 = vadd.f32 %v1008_v37, %v2337_v61 }
 0x27c   :  { %858 = vst.msk [vmem:[#allocation3 + $0x30] sm:$0xff] %vm60_vm5, %v842_v16  ;;  %v1577_v25 = vpop.eup %1576 }
 0x27d   :  { %v1579_v19 = vpop.eup %1578  ;;  %v831_v47 = vmul.f32 %v1577_v25, %v815_v58  ;;  %v1010_v16 = vadd.f32 %v1009_v29, %v2214_v56 }
 0x27e   :  { %v1157_v10 = vmul.f32 0.6931472, %v1579_v19 }
 0x27f   :  { %v586_v60 = vpop.xlane.xlu1 %585  ;;  %v1011_v41 = vadd.f32 %v1010_v16, %v2223_v59 }
 0x280   :  { %v588_v9 = vpop.xlane.xlu2 %587  ;;  %v849_v14 = vadd.f32 %v833_v42, %v586_v60  ;;  %v590_v17 = vpop.xlane.xlu0 %589  ;;  %v1188_v50 = vadd.f32 %v1157_v10, %v2225_v31 }
 0x281   :  { %v850_v52 = vadd.f32 %v834_v0, %v588_v9  ;;  %v851_v22 = vadd.f32 %v835_v5, %v590_v17  ;;  %v1020_v5 = vld [vmem:[#allocation6] sm:$0x1] }
 0x282   :  { %865 = vst.msk [vmem:[#allocation3 + $0x68] sm:$0xff] %vm60_vm5, %v849_v14  ;;  %v1271_v28 = vsel %vm60_vm5, %v1188_v50, 0.0 }
 0x283   :  { %866 = vst.msk [vmem:[#allocation3 + $0x70] sm:$0xff] %vm60_vm5, %v850_v52  ;;  %v1302_v15 = vrot.slane %v1271_v28, 4 }
 0x284   :  { %867 = vst.msk [vmem:[#allocation3 + $0x78] sm:$0xff] %vm60_vm5, %v851_v22 }
 0x285   :  { %v1303_v11 = vadd.f32 %v1302_v15, %v1271_v28 }
 0x287   :  { %v580_v55 = vpop.xlane.xlu1 %579  ;;  %v1304_v60 = vrot.slane %v1303_v11, 2 }
 0x288   :  { %v566_v51 = vpop.xlane.xlu2 %565  ;;  %v846_v48 = vadd.f32 %v830_v18, %v580_v55  ;;  %v996_v38 = vpop.xlane.xlu0 %995 }
 0x289   :  { %v839_v13 = vadd.f32 %v823_v46, %v566_v51  ;;  %v1012_v7 = vadd.f32 %v1011_v41, %v996_v38  ;;  %v1305_v59 = vadd.f32 %v1304_v60, %v1303_v11 }
 0x28a   :  { %862 = vst.msk [vmem:[#allocation3 + $0x50] sm:$0xff] %vm60_vm5, %v846_v48 }
 0x28b   :  { %855 = vst.msk [vmem:[#allocation3 + $0x18] sm:$0xff] %vm60_vm5, %v839_v13  ;;  %v1306_v31 = vrot.slane %v1305_v59, 1 }
 0x28d   :  { %v1307_v39 = vadd.f32 %v1306_v31, %v1305_v59 }
 0x28f   :  { %v574_v32 = vpop.xlane.xlu1 %573 }
 0x290   :  { %v582_v44 = vpop.xlane.xlu2 %581  ;;  %v843_v24 = vadd.f32 %v827_v26, %v574_v32 }
 0x291   :  { %v847_v1 = vadd.f32 %v831_v47, %v582_v44 }
 0x292   :  { %859 = vst.msk [vmem:[#allocation3 + $0x38] sm:$0xff] %vm60_vm5, %v843_v24 }
 0x293   :  { %863 = vst.msk [vmem:[#allocation3 + $0x58] sm:$0xff] %vm60_vm5, %v847_v1 }
 0x298   :  { %v998_v8 = vpop.xlane.xlu2 %997 }
 0x299   :  { %v1013_v43 = vadd.f32 %v1012_v7, %v998_v8 }
 0x29b   :  { %v1014_v30 = vrot.slane %v1013_v43, 4 }
 0x29d   :  { %v1015_v20 = vadd.f32 %v1014_v30, %v1013_v43 }
 0x29f   :  { %v1016_v33 = vrot.slane %v1015_v20, 2 }
 0x2a1   :  { %v1017_v42 = vadd.f32 %v1016_v33, %v1015_v20 }
 0x2a3   :  { %v1018_v0 = vrot.slane %v1017_v42, 1 }
 0x2a5   :  { %v1019_v56 = vadd.f32 %v1018_v0, %v1017_v42 }
 0x2a7   :  { %v1021_v4 = vmul.f32 2.0, %v1019_v56 }
 0x2a9   :  { %v1022_v12 = vsub.f32 %v1020_v5, %v1021_v4 }
 0x2ab   :  { %1024 = vst.msk [vmem:[#allocation6] sm:$0x1] %vm55_vm3, %v1022_v12 }
 0x2b2   :  { %v1270_v9 = vld [vmem:[#allocation6] sm:$0x1] }
 0x2b3   :  { %v1308_v14 = vadd.f32 %v1307_v39, %v1270_v9 }
 0x2b5   :  { %1310 = vst.msk [vmem:[#allocation6] sm:$0x1] %vm55_vm3, %v1308_v14 }
 0x2bc   :  { %v1328_v17 = vld [vmem:[#allocation6] sm:$0x1] }
 0x2d6   :  { %v1332_v63 = vpop.xlane.xlu1 %1331 }
 0x2d7   :  { %v1333_v36 = vadd.f32 %v1332_v63, %v1328_v17 }
 0x2d9   :  { %v1334_v2 = vmul.f32 0.0625, %v1333_v36 }
 0x2db   :  { %1336 = vst.msk [vmem:[#allocation14] sm:$0x1] %vm55_vm3, %v1334_v2 }
 0x2dc   :  { %1347 = dma.vmem_to_hbm [thread:$0]  %s1343_s24, 16, %s1345_s27, [#allocation11]  }
 0x2dd   :  { %1656 = dma.done.wait [#allocation11], 16  }
 0x2de   :  { %1657 = vsyncadd [#allocation11], 4294967280 }
 0x2df   :  { %1352 = vsyncpa [#allocation10], 1 }
 0x2e0   :  { %1353 = vsyncpa [#allocation13], 1 }
 0x2e1   :  { %1354 = vsyncpa [#allocation11], 1 }

</bundles_post_ra>
